<compile_context>
chip_gen: v7x
topology: tpu7x:2x2x1
jax: 0.10.0
libtpu: 0.0.40
codegen_flags: <defaults>
</compile_context>

<pallas_src>
import math

import jax
import jax.numpy as jnp
from jax.experimental import pallas as pl
from jax.experimental.pallas import tpu as pltpu

BN_EPS = 1e-5


# ----------------------------------------------------------------------------
# Fused Pallas kernel: BN(eval) + ReLU + 3x3 conv (pad=1, no bias) + concat
# ----------------------------------------------------------------------------
def bn_relu_conv3x3_cat_kernel(xpad_ref, scale_ref, shift_ref, w_ref, o_ref):
    # xpad_ref : (1, H+2, W+2, C) f32  zero-padded NHWC image (full, per batch)
    # scale_ref: (1, 1, C)        f32  folded BN scale  = gamma / sqrt(var+eps)
    # shift_ref: (1, 1, C)        f32  folded BN shift  = beta - mean * scale
    # w_ref    : (9, C, G)        bf16 conv weights, index dy*3+dx (HWIO order)
    # o_ref    : (1, TH, W, C+G)  f32  [x, conv(relu(bn(x)))] for TH output rows
    th = o_ref.shape[1]
    w_cols = o_ref.shape[2]
    c_in = xpad_ref.shape[3]
    g_out = w_ref.shape[2]
    h_full = xpad_ref.shape[1] - 2

    ht = pl.program_id(1)
    row0 = pl.multiple_of(ht * th, th)          # first padded row of this tile

    # Rows [row0, row0+TH+2) of the padded image cover this tile + its halo.
    slab = xpad_ref[0, pl.ds(row0, th + 2), :, :]            # (TH+2, W+2, C)

    # BN affine + ReLU in f32; force the zero-pad border back to exactly zero
    # (the affine would otherwise turn padded zeros into relu(shift)).
    z = jnp.maximum(slab * scale_ref[...] + shift_ref[...], 0.0)
    rid = jax.lax.broadcasted_iota(jnp.int32, (th + 2, w_cols + 2, 1), 0) + row0
    cid = jax.lax.broadcasted_iota(jnp.int32, (th + 2, w_cols + 2, 1), 1)
    inside = (rid >= 1) & (rid <= h_full) & (cid >= 1) & (cid <= w_cols)
    y = jnp.where(inside, z, 0.0).astype(jnp.bfloat16)       # (TH+2, W+2, C)

    # 3x3 conv as 9 shifted (TH*W, C) @ (C, G) MXU matmuls, f32 accumulation.
    acc = jnp.zeros((th * w_cols, g_out), jnp.float32)
    for dy in range(3):
        for dx in range(3):
            patch = y[dy:dy + th, dx:dx + w_cols, :].reshape(th * w_cols, c_in)
            acc = acc + jnp.dot(patch, w_ref[dy * 3 + dx],
                                preferred_element_type=jnp.float32)

    # Fused channel concat [x, conv_out] -> one lane-dense (C+G)-wide store.
    x_pass = slab[1:1 + th, 1:1 + w_cols, :].reshape(th * w_cols, c_in)
    out = jnp.concatenate([x_pass, acc], axis=-1)            # (TH*W, C+G)
    o_ref[0] = out.reshape(th, w_cols, c_in + g_out).astype(o_ref.dtype)


# ----------------------------------------------------------------------------
# Wrapper
# ----------------------------------------------------------------------------
def single_layer_forward(x_nchw, params, th=8):
    """out = cat((x, conv3x3(relu(bn(x)))), channel_dim); NCHW in / NCHW out."""
    x = jnp.transpose(x_nchw, (0, 2, 3, 1))                  # NHWC
    B, H, W, C = x.shape
    w_hwio = params["w"]                                     # (3, 3, C, G)
    G = w_hwio.shape[-1]

    # Fold eval-mode BatchNorm into a single per-channel affine (done once).
    scale = params["gamma"] / jnp.sqrt(params["var"] + BN_EPS)
    shift = params["beta"] - params["mean"] * scale
    w9 = w_hwio.reshape(9, C, G).astype(jnp.bfloat16)        # bf16 MXU operands

    # Zero "same" padding; the kernel reads shifted windows from this slab,
    # so no 9x-expanded im2col tensor ever hits HBM.
    xpad = jnp.pad(x, ((0, 0), (1, 1), (1, 1), (0, 0)))

    if H % th != 0:
        th = H
    nh = H // th

    out_nhwc = pl.pallas_call(
        bn_relu_conv3x3_cat_kernel,
        out_shape=jax.ShapeDtypeStruct((B, H, W, C + G), x.dtype),
        grid=(B, nh),
        in_specs=[
            # Full padded image per batch element; index_map ignores the row
            # tile -> fetched once per b, revisited across row tiles.
            pl.BlockSpec((1, H + 2, W + 2, C), lambda b, h: (b, 0, 0, 0)),
            pl.BlockSpec((1, 1, C), lambda b, h: (0, 0, 0)),
            pl.BlockSpec((1, 1, C), lambda b, h: (0, 0, 0)),
            pl.BlockSpec((9, C, G), lambda b, h: (0, 0, 0)),
        ],
        out_specs=pl.BlockSpec((1, th, W, C + G), lambda b, h: (b, h, 0, 0)),
        compiler_params=pltpu.CompilerParams(
            dimension_semantics=("parallel", "parallel")),
    )(xpad, scale.reshape(1, 1, C), shift.reshape(1, 1, C), w9)

    return jnp.transpose(out_nhwc, (0, 3, 1, 2))             # back to NCHW


# ----------------------------------------------------------------------------
# Pure-JAX reference for verification
# ----------------------------------------------------------------------------
def reference_forward(x_nchw, params):
    x = jnp.transpose(x_nchw, (0, 2, 3, 1))
    scale = params["gamma"] / jnp.sqrt(params["var"] + BN_EPS)
    shift = params["beta"] - params["mean"] * scale
    y = jnp.maximum(x * scale + shift, 0.0)
    z = jax.lax.conv_general_dilated(
        y, params["w"], (1, 1), ((1, 1), (1, 1)),
        dimension_numbers=("NHWC", "HWIO", "NHWC"),
        precision=jax.lax.Precision.HIGHEST)
    out = jnp.concatenate([x, z], axis=-1)
    return jnp.transpose(out, (0, 3, 1, 2))


# ----------------------------------------------------------------------------
# Demo / self-check
# ----------------------------------------------------------------------------
if __name__ == "__main__":
    B, C, G, H, W = 2, 64, 64, 16, 16     # n_channels=64, growth_rate=64 -> C+G=128 (lane-dense)

    key = jax.random.PRNGKey(0)
    kx, kw, kg, kb, km, kv = jax.random.split(key, 6)
    x = jax.random.normal(kx, (B, C, H, W), jnp.float32)

    fan_in = 9 * C
    bound = 1.0 / math.sqrt(fan_in)
    params = dict(
        w=jax.random.uniform(kw, (3, 3, C, G), jnp.float32, -bound, bound),
        gamma=1.0 + 0.1 * jax.random.normal(kg, (C,), jnp.float32),
        beta=0.1 * jax.random.normal(kb, (C,), jnp.float32),
        mean=0.1 * jax.random.normal(km, (C,), jnp.float32),
        var=jax.random.uniform(kv, (C,), jnp.float32, 0.5, 1.5),
    )

    fwd = jax.jit(single_layer_forward)
    out = jax.block_until_ready(fwd(x, params))
    assert out.shape == (B, C + G, H, W), out.shape

    ref = reference_forward(x, params)
    err = float(jnp.max(jnp.abs(out - ref)))
    assert bool(jnp.all(jnp.isfinite(out))), "non-finite output"
    assert err < 5e-2, f"mismatch vs reference: max abs err = {err}"

    print("KERNEL_OK")
</pallas_src>

<mosaic_0001>
module attributes {stable_mosaic.version = 11 : i64} {
  func.func @bn_relu_conv3x3_cat_kernel(%arg0: i32, %arg1: i32, %arg2: memref<1x18x18x64xf32, #tpu.memory_space<vmem>>, %arg3: memref<1x1x64xf32, #tpu.memory_space<vmem>>, %arg4: memref<1x1x64xf32, #tpu.memory_space<vmem>>, %arg5: memref<9x64x64xbf16, #tpu.memory_space<vmem>>, %arg6: memref<1x8x16x128xf32, #tpu.memory_space<vmem>>) attributes {dimension_semantics = [#tpu.dimension_semantics<parallel>, #tpu.dimension_semantics<parallel>], iteration_bounds = array<i64: 2, 2>, scalar_prefetch = 0 : i64, scratch_operands = 0 : i64, tpu.core_type = #tpu.core_type<tc>, window_params = [{transform_indices = @transform_0, window_bounds = array<i64: 1, 18, 18, 64>}, {pipeline_mode = #tpu.pipeline_mode<synchronous>, transform_indices = @transform_1, window_bounds = array<i64: 1, 1, 64>}, {pipeline_mode = #tpu.pipeline_mode<synchronous>, transform_indices = @transform_2, window_bounds = array<i64: 1, 1, 64>}, {pipeline_mode = #tpu.pipeline_mode<synchronous>, transform_indices = @transform_3, window_bounds = array<i64: 9, 64, 64>}, {transform_indices = @transform_4, window_bounds = array<i64: 1, 8, 16, 128>}]} {
    %c8_i32 = arith.constant 8 : i32
    %0 = arith.muli %arg1, %c8_i32 : i32
    %1 = tpu.assume_multiple %0, 8 : i32
    %c0 = arith.constant 0 : index
    %2 = arith.index_cast %1 : i32 to index
    %c0_0 = arith.constant 0 : index
    %c0_1 = arith.constant 0 : index
    %3 = vector.load %arg2[%c0, %2, %c0_0, %c0_1] : memref<1x18x18x64xf32, #tpu.memory_space<vmem>>, vector<1x10x18x64xf32>
    %4 = vector.shape_cast %3 : vector<1x10x18x64xf32> to vector<10x18x64xf32>
    %c0_2 = arith.constant 0 : index
    %c0_3 = arith.constant 0 : index
    %c0_4 = arith.constant 0 : index
    %5 = vector.load %arg3[%c0_2, %c0_3, %c0_4] : memref<1x1x64xf32, #tpu.memory_space<vmem>>, vector<1x1x64xf32>
    %6 = vector.broadcast %5 : vector<1x1x64xf32> to vector<10x18x64xf32>
    %7 = arith.mulf %4, %6 : vector<10x18x64xf32>
    %c0_5 = arith.constant 0 : index
    %c0_6 = arith.constant 0 : index
    %c0_7 = arith.constant 0 : index
    %8 = vector.load %arg4[%c0_5, %c0_6, %c0_7] : memref<1x1x64xf32, #tpu.memory_space<vmem>>, vector<1x1x64xf32>
    %9 = vector.broadcast %8 : vector<1x1x64xf32> to vector<10x18x64xf32>
    %10 = arith.addf %7, %9 : vector<10x18x64xf32>
    %cst = arith.constant 0.000000e+00 : f32
    %11 = vector.broadcast %cst : f32 to vector<10x18x64xf32>
    %12 = arith.maximumf %10, %11 : vector<10x18x64xf32>
    %13 = tpu.iota {dimensions = array<i32: 0>} : vector<10x18x1xi32>
    %14 = vector.broadcast %1 : i32 to vector<10x18x1xi32>
    %15 = arith.addi %13, %14 : vector<10x18x1xi32>
    %16 = tpu.iota {dimensions = array<i32: 1>} : vector<10x18x1xi32>
    %c1_i32 = arith.constant 1 : i32
    %17 = vector.broadcast %c1_i32 : i32 to vector<10x18x1xi32>
    %18 = arith.cmpi sge, %15, %17 : vector<10x18x1xi32>
    %c16_i32 = arith.constant 16 : i32
    %19 = vector.broadcast %c16_i32 : i32 to vector<10x18x1xi32>
    %20 = arith.cmpi sle, %15, %19 : vector<10x18x1xi32>
    %21 = arith.andi %18, %20 : vector<10x18x1xi1>
    %c1_i32_8 = arith.constant 1 : i32
    %22 = vector.broadcast %c1_i32_8 : i32 to vector<10x18x1xi32>
    %23 = arith.cmpi sge, %16, %22 : vector<10x18x1xi32>
    %24 = arith.andi %21, %23 : vector<10x18x1xi1>
    %c16_i32_9 = arith.constant 16 : i32
    %25 = vector.broadcast %c16_i32_9 : i32 to vector<10x18x1xi32>
    %26 = arith.cmpi sle, %16, %25 : vector<10x18x1xi32>
    %27 = arith.andi %24, %26 : vector<10x18x1xi1>
    %cst_10 = arith.constant 0.000000e+00 : f32
    %28 = vector.shape_cast %27 : vector<10x18x1xi1> to vector<10x18x1xi1>
    %29 = vector.broadcast %28 : vector<10x18x1xi1> to vector<10x18x64xi1>
    %30 = vector.broadcast %cst_10 : f32 to vector<10x18x64xf32>
    %31 = arith.select %29, %12, %30 : vector<10x18x64xi1>, vector<10x18x64xf32>
    %32 = arith.truncf %31 : vector<10x18x64xf32> to vector<10x18x64xbf16>
    %cst_11 = arith.constant 0.000000e+00 : f32
    %33 = vector.broadcast %cst_11 : f32 to vector<128x64xf32>
    %34 = vector.extract_strided_slice %32 {offsets = [0, 0, 0], sizes = [8, 16, 64], strides = [1, 1, 1]} : vector<10x18x64xbf16> to vector<8x16x64xbf16>
    %35 = vector.shape_cast %34 : vector<8x16x64xbf16> to vector<128x64xbf16>
    %c0_12 = arith.constant 0 : index
    %c0_13 = arith.constant 0 : index
    %c0_14 = arith.constant 0 : index
    %36 = vector.load %arg5[%c0_12, %c0_13, %c0_14] : memref<9x64x64xbf16, #tpu.memory_space<vmem>>, vector<1x64x64xbf16>
    %37 = vector.shape_cast %36 : vector<1x64x64xbf16> to vector<64x64xbf16>
    %cst_15 = arith.constant dense<0.000000e+00> : vector<128x64xf32>
    %38 = tpu.matmul %35, %37, %cst_15 {dimension_numbers = #tpu.dot_dimension_numbers<[1], [0], [0], [1], [0, 0, 1, 1], [], []>} : vector<128x64xbf16>, vector<64x64xbf16>, vector<128x64xf32> -> vector<128x64xf32>
    %39 = arith.addf %33, %38 : vector<128x64xf32>
    %40 = vector.extract_strided_slice %32 {offsets = [0, 1, 0], sizes = [8, 16, 64], strides = [1, 1, 1]} : vector<10x18x64xbf16> to vector<8x16x64xbf16>
    %41 = vector.shape_cast %40 : vector<8x16x64xbf16> to vector<128x64xbf16>
    %c1 = arith.constant 1 : index
    %c0_16 = arith.constant 0 : index
    %c0_17 = arith.constant 0 : index
    %42 = vector.load %arg5[%c1, %c0_16, %c0_17] : memref<9x64x64xbf16, #tpu.memory_space<vmem>>, vector<1x64x64xbf16>
    %43 = vector.shape_cast %42 : vector<1x64x64xbf16> to vector<64x64xbf16>
    %cst_18 = arith.constant dense<0.000000e+00> : vector<128x64xf32>
    %44 = tpu.matmul %41, %43, %cst_18 {dimension_numbers = #tpu.dot_dimension_numbers<[1], [0], [0], [1], [0, 0, 1, 1], [], []>} : vector<128x64xbf16>, vector<64x64xbf16>, vector<128x64xf32> -> vector<128x64xf32>
    %45 = arith.addf %39, %44 : vector<128x64xf32>
    %46 = vector.extract_strided_slice %32 {offsets = [0, 2, 0], sizes = [8, 16, 64], strides = [1, 1, 1]} : vector<10x18x64xbf16> to vector<8x16x64xbf16>
    %47 = vector.shape_cast %46 : vector<8x16x64xbf16> to vector<128x64xbf16>
    %c2 = arith.constant 2 : index
    %c0_19 = arith.constant 0 : index
    %c0_20 = arith.constant 0 : index
    %48 = vector.load %arg5[%c2, %c0_19, %c0_20] : memref<9x64x64xbf16, #tpu.memory_space<vmem>>, vector<1x64x64xbf16>
    %49 = vector.shape_cast %48 : vector<1x64x64xbf16> to vector<64x64xbf16>
    %cst_21 = arith.constant dense<0.000000e+00> : vector<128x64xf32>
    %50 = tpu.matmul %47, %49, %cst_21 {dimension_numbers = #tpu.dot_dimension_numbers<[1], [0], [0], [1], [0, 0, 1, 1], [], []>} : vector<128x64xbf16>, vector<64x64xbf16>, vector<128x64xf32> -> vector<128x64xf32>
    %51 = arith.addf %45, %50 : vector<128x64xf32>
    %52 = vector.extract_strided_slice %32 {offsets = [1, 0, 0], sizes = [8, 16, 64], strides = [1, 1, 1]} : vector<10x18x64xbf16> to vector<8x16x64xbf16>
    %53 = vector.shape_cast %52 : vector<8x16x64xbf16> to vector<128x64xbf16>
    %c3 = arith.constant 3 : index
    %c0_22 = arith.constant 0 : index
    %c0_23 = arith.constant 0 : index
    %54 = vector.load %arg5[%c3, %c0_22, %c0_23] : memref<9x64x64xbf16, #tpu.memory_space<vmem>>, vector<1x64x64xbf16>
    %55 = vector.shape_cast %54 : vector<1x64x64xbf16> to vector<64x64xbf16>
    %cst_24 = arith.constant dense<0.000000e+00> : vector<128x64xf32>
    %56 = tpu.matmul %53, %55, %cst_24 {dimension_numbers = #tpu.dot_dimension_numbers<[1], [0], [0], [1], [0, 0, 1, 1], [], []>} : vector<128x64xbf16>, vector<64x64xbf16>, vector<128x64xf32> -> vector<128x64xf32>
    %57 = arith.addf %51, %56 : vector<128x64xf32>
    %58 = vector.extract_strided_slice %32 {offsets = [1, 1, 0], sizes = [8, 16, 64], strides = [1, 1, 1]} : vector<10x18x64xbf16> to vector<8x16x64xbf16>
    %59 = vector.shape_cast %58 : vector<8x16x64xbf16> to vector<128x64xbf16>
    %c4 = arith.constant 4 : index
    %c0_25 = arith.constant 0 : index
    %c0_26 = arith.constant 0 : index
    %60 = vector.load %arg5[%c4, %c0_25, %c0_26] : memref<9x64x64xbf16, #tpu.memory_space<vmem>>, vector<1x64x64xbf16>
    %61 = vector.shape_cast %60 : vector<1x64x64xbf16> to vector<64x64xbf16>
    %cst_27 = arith.constant dense<0.000000e+00> : vector<128x64xf32>
    %62 = tpu.matmul %59, %61, %cst_27 {dimension_numbers = #tpu.dot_dimension_numbers<[1], [0], [0], [1], [0, 0, 1, 1], [], []>} : vector<128x64xbf16>, vector<64x64xbf16>, vector<128x64xf32> -> vector<128x64xf32>
    %63 = arith.addf %57, %62 : vector<128x64xf32>
    %64 = vector.extract_strided_slice %32 {offsets = [1, 2, 0], sizes = [8, 16, 64], strides = [1, 1, 1]} : vector<10x18x64xbf16> to vector<8x16x64xbf16>
    %65 = vector.shape_cast %64 : vector<8x16x64xbf16> to vector<128x64xbf16>
    %c5 = arith.constant 5 : index
    %c0_28 = arith.constant 0 : index
    %c0_29 = arith.constant 0 : index
    %66 = vector.load %arg5[%c5, %c0_28, %c0_29] : memref<9x64x64xbf16, #tpu.memory_space<vmem>>, vector<1x64x64xbf16>
    %67 = vector.shape_cast %66 : vector<1x64x64xbf16> to vector<64x64xbf16>
    %cst_30 = arith.constant dense<0.000000e+00> : vector<128x64xf32>
    %68 = tpu.matmul %65, %67, %cst_30 {dimension_numbers = #tpu.dot_dimension_numbers<[1], [0], [0], [1], [0, 0, 1, 1], [], []>} : vector<128x64xbf16>, vector<64x64xbf16>, vector<128x64xf32> -> vector<128x64xf32>
    %69 = arith.addf %63, %68 : vector<128x64xf32>
    %70 = vector.extract_strided_slice %32 {offsets = [2, 0, 0], sizes = [8, 16, 64], strides = [1, 1, 1]} : vector<10x18x64xbf16> to vector<8x16x64xbf16>
    %71 = vector.shape_cast %70 : vector<8x16x64xbf16> to vector<128x64xbf16>
    %c6 = arith.constant 6 : index
    %c0_31 = arith.constant 0 : index
    %c0_32 = arith.constant 0 : index
    %72 = vector.load %arg5[%c6, %c0_31, %c0_32] : memref<9x64x64xbf16, #tpu.memory_space<vmem>>, vector<1x64x64xbf16>
    %73 = vector.shape_cast %72 : vector<1x64x64xbf16> to vector<64x64xbf16>
    %cst_33 = arith.constant dense<0.000000e+00> : vector<128x64xf32>
    %74 = tpu.matmul %71, %73, %cst_33 {dimension_numbers = #tpu.dot_dimension_numbers<[1], [0], [0], [1], [0, 0, 1, 1], [], []>} : vector<128x64xbf16>, vector<64x64xbf16>, vector<128x64xf32> -> vector<128x64xf32>
    %75 = arith.addf %69, %74 : vector<128x64xf32>
    %76 = vector.extract_strided_slice %32 {offsets = [2, 1, 0], sizes = [8, 16, 64], strides = [1, 1, 1]} : vector<10x18x64xbf16> to vector<8x16x64xbf16>
    %77 = vector.shape_cast %76 : vector<8x16x64xbf16> to vector<128x64xbf16>
    %c7 = arith.constant 7 : index
    %c0_34 = arith.constant 0 : index
    %c0_35 = arith.constant 0 : index
    %78 = vector.load %arg5[%c7, %c0_34, %c0_35] : memref<9x64x64xbf16, #tpu.memory_space<vmem>>, vector<1x64x64xbf16>
    %79 = vector.shape_cast %78 : vector<1x64x64xbf16> to vector<64x64xbf16>
    %cst_36 = arith.constant dense<0.000000e+00> : vector<128x64xf32>
    %80 = tpu.matmul %77, %79, %cst_36 {dimension_numbers = #tpu.dot_dimension_numbers<[1], [0], [0], [1], [0, 0, 1, 1], [], []>} : vector<128x64xbf16>, vector<64x64xbf16>, vector<128x64xf32> -> vector<128x64xf32>
    %81 = arith.addf %75, %80 : vector<128x64xf32>
    %82 = vector.extract_strided_slice %32 {offsets = [2, 2, 0], sizes = [8, 16, 64], strides = [1, 1, 1]} : vector<10x18x64xbf16> to vector<8x16x64xbf16>
    %83 = vector.shape_cast %82 : vector<8x16x64xbf16> to vector<128x64xbf16>
    %c8 = arith.constant 8 : index
    %c0_37 = arith.constant 0 : index
    %c0_38 = arith.constant 0 : index
    %84 = vector.load %arg5[%c8, %c0_37, %c0_38] : memref<9x64x64xbf16, #tpu.memory_space<vmem>>, vector<1x64x64xbf16>
    %85 = vector.shape_cast %84 : vector<1x64x64xbf16> to vector<64x64xbf16>
    %cst_39 = arith.constant dense<0.000000e+00> : vector<128x64xf32>
    %86 = tpu.matmul %83, %85, %cst_39 {dimension_numbers = #tpu.dot_dimension_numbers<[1], [0], [0], [1], [0, 0, 1, 1], [], []>} : vector<128x64xbf16>, vector<64x64xbf16>, vector<128x64xf32> -> vector<128x64xf32>
    %87 = arith.addf %81, %86 : vector<128x64xf32>
    %88 = vector.extract_strided_slice %4 {offsets = [1, 1, 0], sizes = [8, 16, 64], strides = [1, 1, 1]} : vector<10x18x64xf32> to vector<8x16x64xf32>
    %89 = vector.shape_cast %88 : vector<8x16x64xf32> to vector<128x64xf32>
    %90 = tpu.concatenate %89, %87 in 1 : vector<128x64xf32>, vector<128x64xf32> -> vector<128x128xf32>
    %91 = vector.shape_cast %90 : vector<128x128xf32> to vector<8x16x128xf32>
    %c0_40 = arith.constant 0 : index
    %c0_41 = arith.constant 0 : index
    %c0_42 = arith.constant 0 : index
    %c0_43 = arith.constant 0 : index
    %92 = vector.load %arg6[%c0_40, %c0_41, %c0_42, %c0_43] : memref<1x8x16x128xf32, #tpu.memory_space<vmem>>, vector<1x8x16x128xf32>
    %93 = vector.shape_cast %92 : vector<1x8x16x128xf32> to vector<8x16x128xf32>
    %94 = vector.shape_cast %91 : vector<8x16x128xf32> to vector<1x8x16x128xf32>
    tpu.vector_store %arg6[%c0_40, %c0_41, %c0_42, %c0_43], %94 {strides = array<i32>} : memref<1x8x16x128xf32, #tpu.memory_space<vmem>>, vector<1x8x16x128xf32>,
    return
  }
  func.func @transform_0(%arg0: i32, %arg1: i32) -> (i32, i32, i32, i32) {
    %c0_i32 = arith.constant 0 : i32
    %c0_i32_0 = arith.constant 0 : i32
    %c0_i32_1 = arith.constant 0 : i32
    %c0_i32_2 = arith.constant 0 : i32
    return %arg0, %c0_i32, %c0_i32_0, %c0_i32_1 : i32, i32, i32, i32
  }
  func.func @transform_1(%arg0: i32, %arg1: i32) -> (i32, i32, i32) {
    %c0_i32 = arith.constant 0 : i32
    %c0_i32_0 = arith.constant 0 : i32
    %c0_i32_1 = arith.constant 0 : i32
    %c0_i32_2 = arith.constant 0 : i32
    return %c0_i32, %c0_i32_0, %c0_i32_1 : i32, i32, i32
  }
  func.func @transform_2(%arg0: i32, %arg1: i32) -> (i32, i32, i32) {
    %c0_i32 = arith.constant 0 : i32
    %c0_i32_0 = arith.constant 0 : i32
    %c0_i32_1 = arith.constant 0 : i32
    %c0_i32_2 = arith.constant 0 : i32
    return %c0_i32, %c0_i32_0, %c0_i32_1 : i32, i32, i32
  }
  func.func @transform_3(%arg0: i32, %arg1: i32) -> (i32, i32, i32) {
    %c0_i32 = arith.constant 0 : i32
    %c0_i32_0 = arith.constant 0 : i32
    %c0_i32_1 = arith.constant 0 : i32
    %c0_i32_2 = arith.constant 0 : i32
    return %c0_i32, %c0_i32_0, %c0_i32_1 : i32, i32, i32
  }
  func.func @transform_4(%arg0: i32, %arg1: i32) -> (i32, i32, i32, i32) {
    %c0_i32 = arith.constant 0 : i32
    %c0_i32_0 = arith.constant 0 : i32
    %c0_i32_1 = arith.constant 0 : i32
    return %arg0, %arg1, %c0_i32, %c0_i32_0 : i32, i32, i32, i32
  }
}

</mosaic_0001>

<bundles_post_ra>
// kernel: single_layer_forward.1
= control target key start
LH: loop header
LB: loop body
LE: loop exit
PB: predicated region body
PF: predicated region fallthrough
CT: control target
= control target key end

     0   :  { %9 = vsyncpa [#allocation3], 0  ;;  %s4176_s0 = inlined_call_operand.vmem [shape: f32[2,18,18,64], index: 0, kind: input, shape index: {}]   ;;  %s4177_s1 = inlined_call_operand.vmem [shape: f32[1,1,64], index: 1, kind: input, shape index: {}]   ;;  %s4178_s2 = inlined_call_operand.vmem [shape: f32[1,1,64], index: 2, kind: input, shape index: {}]   ;;  %s4179_s3 = inlined_call_operand.vmem [shape: bf16[9,64,64], index: 3, kind: input, shape index: {}]   ;;  %s4180_s4 = inlined_call_operand.hbm [shape: f32[2,16,16,128], index: 4, kind: output, shape index: {}]  }
   0x1   :  { %11 = vsyncpa [#allocation3 + $0x1], 0  ;;  %s3280_s15 = smov 0   ;;  %s3282_s16 = smov 0  }
   0x2   :  { %s3284_s17 = smov 0   ;;  %s3286_s18 = smov 0  }
   0x3   :  { %s3288_s19 = smov 0   ;;  %s3290_s20 = smov 0  }
   0x4   :  { %s3292_s21 = smov 0   ;;  %s3294_s22 = smov 0  }
   0x5 LB: > { %s2375_s23 = sadd.s32 4294967295, %s3249_s22   ;;  %s2376_s24 = sadd.s32 4294967294, %s3249_s22   ;;  %s3249_s22 = sphi %s3294_s22, %s17_s22   ;;  %s3245_s21 = sphi %s3292_s21, %s4199_s21   ;;  %s3241_s20 = sphi %s3290_s20, %s4198_s20   ;;  %s3237_s19 = sphi %s3288_s19, %s4197_s19   ;;  %s3233_s18 = sphi %s3286_s18, %s4196_s18   ;;  %s3229_s17 = sphi %s3284_s17, %s4195_s17   ;;  %s3225_s16 = sphi %s3282_s16, %s4194_s16   ;;  %s3221_s15 = sphi %s3280_s15, %s4193_s15  }
   0x6   : > { %s26_s25 = sadd.s32 1, %s3241_s20  ;;  %s29_s26 = sadd.s32 1, %s3245_s21 }
   0x7   : > { %p27_p0 = scmp.ge.s32.totalorder %s26_s25, 2  ;;  %p137_p1 = scmp.ne.s32.totalorder %s3229_s17, %s3225_s16 }
   0x8   : > { %p138_p2 = scmp.eq.s32.totalorder %s2375_s23, 3  ;;  %p143_p5 = scmp.ne.s32.totalorder %s3225_s16, %s3221_s15 }
   0x9   : > { %s4201_s25 = smov (%p27_p0, %s26_s25), 0  ;;  %s4203_s26 = smov (!%p27_p0, %s29_s26), %s3245_s21 }
   0xa   : > { %s123_s27 = ssub.s32 %s3241_s20, %s4201_s25  ;;  %p3331_p3 = por %p138_p2, %p137_p1 }
   0xb   : > { %p31_p4 = scmp.ge.s32.totalorder %s4203_s26, 2  ;;  %p144_p6 = scmp.eq.s32.totalorder %s2376_s24, 3 }
   0xc   : > { %p2379_p7 = scmp.ge.s32.totalorder %s3249_s22, 1  ;;  %p179_p9 = scmp.lt.s32.totalorder %s3249_s22, 5 }
   0xd   : > { %s4205_s26 = smov (%p31_p4, %s4203_s26), 0  ;;  %p3340_p8 = por %p144_p6, %p143_p5 }
   0xe   : > { %s122_s30 = ssub.s32 %s3245_s21, %s4205_s26  ;;  %s127_s5 = sadd.s32 1, %s3229_s17 }
   0xf   : > { %s124_s6 = sor.u32 %s123_s27, %s122_s30  ;;  %p180_p10 = pnand %p2379_p7, %p179_p9 }
  0x10   : > { %p125_p11 = scmp.eq.s32.totalorder %s124_s6, 0  ;;  %v3101_v0 = vld [vmem:[%s4179_s3 + $0x20] sm:$0xff] (!%p180_p10)   ;;  %p205_p12 = scmp.lt.s32.totalorder (!%p180_p10), %s3237_s19, 1  ;;  %v359_v2 = vlaneseq (!%p180_p10)  ;;  %v3103_v3 = vld [vmem:[%s4179_s3 + $0x28] sm:$0xff] (!%p180_p10)   ;;  %v3105_v5 = vld [vmem:[%s4179_s3 + $0x30] sm:$0xff] (!%p180_p10)   ;;  %vm707_vm10 = vcmask (!%p180_p10), 523264  }
  0x11   : > { %183 = sbr.rel (%p180_p10) target bundleno = 551 (0x227), region = 36  ;;  %v3102_v1 = vld [vmem:[%s4179_s3 + $0x80] sm:$0xff] (!%p180_p10)   ;;  %s2382_s12 = sshll.u32 (!%p180_p10), %s3233_s18, 3  ;;  %2674 = vmatprep.subr.bf16.mxu1 (!%p180_p10), %v3101_v0  ;;  %v3104_v4 = vld [vmem:[%s4179_s3 + $0x88] sm:$0xff] (!%p180_p10)   ;;  %v3106_v6 = vld [vmem:[%s4179_s3 + $0x90] sm:$0xff] (!%p180_p10)  }
  0x12   : > { %s3349_s7 = scalar_select %p125_p11, %s3229_s17, %s127_s5  }
  0x13   : > { %2770 = vmatprep.subr.bf16.mxu0 (!%p180_p10), %v3102_v1  ;;  %2675 = vmatpush3.bf16.msra.mxu1 (!%p180_p10), %v3101_v0  ;;  %s2383_s30 = smul.u32 (!%p180_p10), 192, %s3233_s18  ;;  %v3373_v7 = vstv (!%p180_p10), %s2382_s12  ;;  %v3375_v8 = vshrl.u32 (!%p180_p10), %v359_v2, 7  ;;  %v3107_v9 = vld [vmem:[%s4179_s3 + $0x38] sm:$0xff] (!%p180_p10)   ;;  %v3400_v15 = vld [vmem:[%s4177_s1] ss:$0 sm:$0xff] (!%p180_p10)  ;;  %s3251_s24 = smov (!%p180_p10), 64  }
  0x14   : > { %2771 = vmatpush3.bf16.msra.mxu0 (!%p180_p10), %v3102_v1  ;;  %2676 = vmatprep.subr.bf16.mxu1 (!%p180_p10), %v3103_v3  ;;  %vm363_vm0 = vcmp.ge.s32.totalorder (!%p180_p10), %v3373_v7, 1  ;;  %v3108_v10 = vld [vmem:[%s4179_s3 + $0x98] sm:$0xff] (!%p180_p10)   ;;  %vm373_vm1 = vcmp.le.s32.totalorder (!%p180_p10), %v3373_v7, 16  ;;  %v3405_v16 = vld [vmem:[%s4178_s2] ss:$0 sm:$0xff] (!%p180_p10)  ;;  %v350_v25 = vadd.s32 (!%p180_p10), 1, %v3373_v7 }
  0x15   : > { %2772 = vmatprep.subr.bf16.mxu0 (!%p180_p10), %v3104_v4  ;;  %v3390_v11 = vadd.s32 (!%p180_p10), 16, %v3375_v8  ;;  %vm393_vm2 = vcmp.ge.s32.totalorder (!%p180_p10), %v3375_v8, 1  ;;  %vm3409_vm3 = vmand (!%p180_p10), %vm363_vm0, %vm373_vm1  ;;  %v3436_v23 = vld [vmem:[%s4179_s3] sm:$0xff] (!%p180_p10)   ;;  %v3441_v26 = vadd.s32 (!%p180_p10), 2, %v3373_v7  ;;  %v3444_v27 = vadd.s32 (!%p180_p10), 3, %v3373_v7  ;;  %s2561_s12 = sshll.u32 (!%p180_p10), %s3237_s19, 5 }
  0x16   : > { %vm3421_vm5 = vmand (!%p180_p10), %vm3409_vm3, %vm393_vm2  ;;  %v3452_v33 = vadd.s32 (!%p180_p10), 4, %v3373_v7  ;;  %vm364_vm7 = vcmp.ge.s32.totalorder (!%p180_p10), %v350_v25, 1  ;;  %v3460_v37 = vld [vmem:[%s4179_s3 + $0xa0] sm:$0xff] (!%p180_p10)   ;;  %vm577_vm8 = vsmask.f32 (!%p180_p10), 7424  ;;  %vm374_vm9 = vcmp.le.s32.totalorder (!%p180_p10), %v350_v25, 16 }
  0x17   : > { %2677 = vmatpush3.bf16.msra.mxu1 (!%p180_p10), %v3103_v3  ;;  %vm428_vm4 = vcmp.le.s32.totalorder (!%p180_p10), %v3390_v11, 16  ;;  %vm3467_vm11 = vmand (!%p180_p10), %vm364_vm7, %vm374_vm9  ;;  %vm365_vm14 = vcmp.ge.s32.totalorder (!%p180_p10), %v3441_v26, 1  ;;  %vm375_vm15 = vcmp.le.s32.totalorder (!%p180_p10), %v3441_v26, 16  ;;  %vm376_vm7 = vcmp.le.s32.totalorder (!%p180_p10), %v3444_v27, 16  ;;  %s3252_s14 = smov (!%p180_p10), [#allocation2]  }
  0x18   : > { %s206_s23 = scalar_select %p205_p12, %s3237_s19, 1  ;;  %2773 = vmatpush3.bf16.msra.mxu0 %v3104_v4  ;;  %2678 = vmatprep.subr.bf16.mxu1 %v3105_v5  ;;  %vm3429_vm6 = vmand %vm3409_vm3, %vm428_vm4 }
  0x19   : > { %2774 = vmatprep.subr.bf16.mxu0 %v3106_v6  ;;  %vm399_vm12 = vmand %vm3467_vm11, %vm393_vm2 }
  0x1a   : > { %s3026_s8 = smul.u32 432, %s206_s23  ;;  %vm434_vm13 = vmand %vm3467_vm11, %vm428_vm4 }
  0x1b   : > { %2679 = vmatpush3.bf16.msra.mxu1 %v3105_v5  ;;  %vm385_vm0 = vmand %vm365_vm14, %vm375_vm15 }
  0x1c   : > { %s209_s27 = scalar_lea.vmem %s4176_s0, %s3026_s8  ;;  %2775 = vmatpush3.bf16.msra.mxu0 %v3106_v6  ;;  %2680 = vmatprep.subr.bf16.mxu1 %v3107_v9  ;;  %vm402_vm1 = vmand %vm385_vm0, %vm393_vm2 }
  0x1d   : > { %s3387_s6 = scalar_lea.vmem %s209_s27, %s2383_s30  ;;  %2776 = vmatprep.subr.bf16.mxu0 %v3108_v10  ;;  %s202_s27 = sand.u32 1, %s3225_s16  }
  0x1e   : > { %v215_v12 = vld [vmem:[%s3387_s6] sm:$0xff]  ;;  %v216_v13 = vld [vmem:[%s3387_s6 + $0x8] sm:$0xff]  ;;  %v217_v14 = vld [vmem:[%s3387_s6 + $0x10] sm:$0x3]  ;;  %s2380_s23 = sshll.u32 %s202_s27, 7  ;;  %s4124_s11 = scalar_lea.sflag [#allocation3], %s202_s27 }
  0x1f   : > { %v252_v18 = vmul.f32 %v3400_v15, %v215_v12  ;;  %v253_v19 = vmul.f32 %v3400_v15, %v216_v13  ;;  %v254_v20 = vmul.f32 %v3400_v15, %v217_v14  ;;  %v218_v24 = vld [vmem:[%s3387_s6 + $0x18] sm:$0xff]  ;;  %v219_v31 = vld [vmem:[%s3387_s6 + $0x20] sm:$0xff]  ;;  %v220_v32 = vld [vmem:[%s3387_s6 + $0x28] sm:$0x3]  ;;  %2681 = vmatpush3.bf16.msra.mxu1 %v3107_v9  ;;  %s4047_s5 = scalar_lea.vmem [#allocation2], %s2380_s23 }
  0x20   : > { %v255_v34 = vmul.f32 %v3400_v15, %v218_v24  ;;  %v256_v35 = vmul.f32 %v3400_v15, %v219_v31  ;;  %v257_v36 = vmul.f32 %v3400_v15, %v220_v32  ;;  %v221_v38 = vld [vmem:[%s3387_s6 + $0x30] sm:$0xff]  ;;  %v222_v42 = vld [vmem:[%s3387_s6 + $0x38] sm:$0xff]  ;;  %v223_v47 = vld [vmem:[%s3387_s6 + $0x40] sm:$0x3]  ;;  %2777 = vmatpush3.bf16.msra.mxu0 %v3108_v10  ;;  %2698 = vmatprep.subr.bf16.mxu1 %v3436_v23  ;;  %s2297_s19 = sshll.u32 %s4047_s5, 4  ;;  %s4117_s19 = int_to_ptr.vmem [resolvable:$true] %s2297_s19 }
  0x21   : > { %v289_v28 = vadd.f32 %v3405_v16, %v252_v18  ;;  %v290_v29 = vadd.f32 %v3405_v16, %v253_v19  ;;  %v291_v30 = vadd.f32 %v3405_v16, %v254_v20  ;;  %v258_v48 = vmul.f32 %v3400_v15, %v221_v38  ;;  %2794 = vmatprep.subr.bf16.mxu0 %v3460_v37  ;;  %v224_v12 = vld [vmem:[%s3387_s6 + $0x48] sm:$0xff]  ;;  %v225_v13 = vld [vmem:[%s3387_s6 + $0x50] sm:$0xff]  ;;  %v226_v14 = vld [vmem:[%s3387_s6 + $0x58] sm:$0x3]  ;;  %s3155_s13 = scalar_lea.vmem %s4117_s19, 2048 }
  0x22   : > { %v292_v43 = vadd.f32 %v3405_v16, %v255_v34  ;;  %v293_v44 = vadd.f32 %v3405_v16, %v256_v35  ;;  %v294_v45 = vadd.f32 %v3405_v16, %v257_v36  ;;  %v259_v52 = vmul.f32 %v3400_v15, %v222_v42  ;;  %p3156_p13 = scmp.ne.s32.totalorder %s4117_s19, %s3155_s13 }
  0x23   : > { %v319_v39 = vmax.f32 %v289_v28, 0.0  ;;  %v320_v40 = vmax.f32 %v290_v29, 0.0  ;;  %v321_v41 = vmax.f32 %v291_v30, 0.0  ;;  %v260_v58 = vmul.f32 %v3400_v15, %v223_v47 }
  0x24   : > { %v322_v55 = vmax.f32 %v292_v43, 0.0  ;;  %v323_v56 = vmax.f32 %v293_v44, 0.0  ;;  %v324_v57 = vmax.f32 %v294_v45, 0.0  ;;  %v295_v59 = vadd.f32 %v3405_v16, %v258_v48  ;;  %v227_v43 = vld [vmem:[%s3387_s6 + $0x60] sm:$0xff]  ;;  %v228_v44 = vld [vmem:[%s3387_s6 + $0x68] sm:$0xff]  ;;  %p3157_p0 = pnand %p3156_p13, %p3331_p3 }
  0x25   : > { %v519_v49 = vsel %vm3421_vm5, %v319_v39, 0.0  ;;  %v520_v50 = vsel %vm3409_vm3, %v320_v40, 0.0  ;;  %v521_v51 = vsel %vm3429_vm6, %v321_v41, 0.0  ;;  %v296_v60 = vadd.f32 %v3405_v16, %v259_v52  ;;  %vm437_vm5 = vmand %vm385_vm0, %vm428_vm4  ;;  %v3112_v41 = vld [vmem:[%s4179_s3 + $0x8] sm:$0xff]  }
  0x26   : > { %v3485_v53 = vpack.c.bf16 %v520_v50, %v519_v49  ;;  %v3487_v54 = vpack.c.bf16 %v521_v51, %v521_v51  ;;  %v522_v0 = vsel %vm399_vm12, %v322_v55, 0.0  ;;  %v523_v1 = vsel %vm3467_vm11, %v323_v56, 0.0  ;;  %v229_v49 = vld [vmem:[%s3387_s6 + $0x70] sm:$0x3]  ;;  %p3158_p1 = pneg %p3157_p0 }
  0x27   : > { %v524_v2 = vsel %vm434_vm13, %v324_v57, 0.0  ;;  %v297_v3 = vadd.f32 %v3405_v16, %v260_v58  ;;  %v325_v4 = vmax.f32 %v295_v59, 0.0  ;;  %v3503_v9 = vpack.c.bf16 %v523_v1, %v522_v0  ;;  %v230_v1 = vld [vmem:[%s3387_s6 + $0x78] sm:$0xff] }
  0x28   : > { %v579_v61 = vshrl.u32 %v3485_v53, 16  ;;  %v581_v62 = vshll.u32 %v3485_v53, 16  ;;  %v586_v63 = vshll.u32 %v3487_v54, 16  ;;  %v3505_v10 = vpack.c.bf16 %v524_v2, %v524_v2 }
  0x29   : > { %v326_v17 = vmax.f32 %v296_v60, 0.0  ;;  %v327_v18 = vmax.f32 %v297_v3, 0.0  ;;  %v591_v20 = vshrl.u32 %v3503_v9, 16  ;;  %v593_v21 = vshll.u32 %v3503_v9, 16  ;;  %v3111_v60 = vld [vmem:[%s4179_s3 + $0xa8] sm:$0xff]  }
  0x2a   : > { %v583_v5 = vrot.slane %v581_v62, 1  ;;  %v588_v6 = vrot.slane %v586_v63, 1  ;;  %v598_v22 = vshll.u32 %v3505_v10, 16  ;;  %v261_v25 = vmul.f32 %v3400_v15, %v224_v12  ;;  %v232_v12 = vld [vmem:[%s3387_s6 + $0x88] sm:$0x3] }
  0x2b   : > { %v526_v24 = vsel %vm385_vm0, %v326_v17, 0.0  ;;  %v262_v28 = vmul.f32 %v3400_v15, %v225_v13  ;;  %v263_v29 = vmul.f32 %v3400_v15, %v226_v14  ;;  %vm982_vm3 = vcmask 1046528  }
  0x2c   : > { %v584_v19 = vor.u32 %v583_v5, %v579_v61  ;;  %v595_v30 = vrot.slane %v593_v21, 1  ;;  %v600_v31 = vrot.slane %v598_v22, 1  ;;  %v525_v32 = vsel %vm402_vm1, %v325_v4, 0.0 }
  0x2d   : > { %v527_v34 = vsel %vm437_vm5, %v327_v18, 0.0  ;;  %v3524_v35 = vpack.c.bf16 %v526_v24, %v525_v32  ;;  %v298_v36 = vadd.f32 %v3405_v16, %v261_v25  ;;  %v299_v38 = vadd.f32 %v3405_v16, %v262_v28  ;;  %v3113_v25 = vld [vmem:[%s4179_s3 + $0xb0] sm:$0xff]   ;;  %v3117_v32 = vld [vmem:[%s4179_s3 + $0x18] sm:$0xff]  }
  0x2e   : > { %v589_v26 = vsel %vm577_vm8, %v584_v19, %v588_v6  ;;  %v596_v39 = vor.u32 %v595_v30, %v591_v20  ;;  %v3528_v40 = vpack.c.bf16 %v527_v34, %v527_v34  ;;  %v300_v42 = vadd.f32 %v3405_v16, %v263_v29  ;;  %v3571_v6 = vld [vmem:[%s3387_s6 + $0x80] sm:$0xff] }
  0x2f   : > { %2682 = vmatprep.mubr.msk.bf16.mxu1 %vm707_vm10, %v589_v26  ;;  %vm366_vm6 = vcmp.ge.s32.totalorder %v3444_v27, 1  ;;  %v603_v45 = vshrl.u32 %v3524_v35, 16  ;;  %v605_v46 = vshll.u32 %v3524_v35, 16  ;;  %v328_v47 = vmax.f32 %v298_v36, 0.0 }
  0x30   : > { %v329_v48 = vmax.f32 %v299_v38, 0.0  ;;  %v601_v50 = vsel %vm577_vm8, %v596_v39, %v600_v31  ;;  %v610_v51 = vshll.u32 %v3528_v40, 16  ;;  %v990_v52 = vrot.slane %v3528_v40, 1  ;;  %vm386_vm9 = vmand %vm366_vm6, %vm376_vm7 }
  0x31   : > { %v330_v55 = vmax.f32 %v300_v42, 0.0  ;;  %2778 = vmatprep.mubr.msk.bf16.mxu0 %vm707_vm10, %v601_v50  ;;  %2683 = vmatmul.mubr.msk.bf16.vlgmr.msra.gmra.mrb[0].mxu1 %vm707_vm10, %v601_v50  ;;  %v607_v56 = vrot.slane %v605_v46, 1  ;;  %v264_v57 = vmul.f32 %v3400_v15, %v227_v43  ;;  %v265_v58 = vmul.f32 %v3400_v15, %v228_v44  ;;  %vm405_vm13 = vmand %vm386_vm9, %vm393_vm2  ;;  %v3114_v42 = vld [vmem:[%s4179_s3 + $0xb8] sm:$0xff]   ;;  %v3631_v46 = vld [vmem:[%s3387_s6 + $0x90] sm:$0xff] }
  0x32   : > { %2699 = vmatpush3.bf16.msra.mxu1 %v3436_v23  ;;  %v612_v59 = vrot.slane %v610_v51, 1  ;;  %v266_v61 = vmul.f32 %v3400_v15, %v229_v49  ;;  %vm367_vm11 = vcmp.ge.s32.totalorder %v3452_v33, 1  ;;  %vm377_vm12 = vcmp.le.s32.totalorder %v3452_v33, 16  ;;  %v3115_v23 = vld [vmem:[%s4179_s3 + $0x10] sm:$0xff]   ;;  %vm440_vm14 = vmand %vm386_vm9, %vm428_vm4 }
  0x33   : > { %v608_v62 = vor.u32 %v607_v56, %v603_v45  ;;  %2700 = vmatprep.subr.bf16.mxu1 %v3112_v41  ;;  %v529_v63 = vsel %vm386_vm9, %v329_v48, 0.0  ;;  %v301_v27 = vadd.f32 %v3405_v16, %v264_v57  ;;  %v302_v0 = vadd.f32 %v3405_v16, %v265_v58  ;;  %vm3583_vm15 = vmand %vm367_vm11, %vm377_vm12 }
  0x34   : > { %v528_v2 = vsel %vm405_vm13, %v328_v47, 0.0  ;;  %v303_v3 = vadd.f32 %v3405_v16, %v266_v61  ;;  %v986_v4 = vrot.slane %v3503_v9, 1  ;;  %v987_v5 = vrot.slane %v3505_v10, 1  ;;  %vm408_vm0 = vmand %vm3583_vm15, %vm393_vm2  ;;  %v3634_v47 = vld [vmem:[%s3387_s6 + $0xa0] sm:$0x3] }
  0x35   : > { %v3575_v13 = vsel %vm577_vm8, %v608_v62, %v612_v59  ;;  %v530_v14 = vsel %vm440_vm14, %v330_v55, 0.0  ;;  %v3577_v17 = vpack.c.bf16 %v529_v63, %v528_v2  ;;  %v331_v18 = vmax.f32 %v301_v27, 0.0  ;;  %vm443_vm1 = vmand %vm3583_vm15, %vm428_vm4  ;;  %v3640_v55 = vld [vmem:[%s3387_s6 + $0x98] sm:$0xff]  ;;  %v3646_v59 = vld [vmem:[%s4179_s3 + $0x40] sm:$0xff]  }
  0x36   : > { %2779 = vmatmul.mubr.msk.bf16.vlgmr.msra.gmra.mrb[0].mxu0 %vm707_vm10, %v3575_v13  ;;  %2686 = vmatprep.mubr.msk.bf16.mxu1 %vm707_vm10, %v3575_v13  ;;  %v3591_v10 = vpack.c.bf16 %v530_v14, %v530_v14  ;;  %v332_v20 = vmax.f32 %v302_v0, 0.0  ;;  %v333_v21 = vmax.f32 %v303_v3, 0.0  ;;  %v3598_v33 = vsel %vm982_vm3, %v986_v4, %v987_v5 }
  0x37   : > { %2795 = vmatpush3.bf16.msra.mxu0 %v3460_v37  ;;  %v615_v22 = vshrl.u32 %v3577_v17, 16  ;;  %v617_v24 = vshll.u32 %v3577_v17, 16  ;;  %2701 = vmatpush3.bf16.msra.mxu1 %v3112_v41  ;;  %v531_v28 = vsel %vm408_vm0, %v331_v18, 0.0  ;;  %v267_v29 = vmul.f32 %v3400_v15, %v230_v1 }
  0x38   : > { %2796 = vmatprep.subr.bf16.mxu0 %v3111_v60  ;;  %v622_v37 = vshll.u32 %v3591_v10, 16  ;;  %v532_v26 = vsel %vm3583_vm15, %v332_v20, 0.0  ;;  %v533_v30 = vsel %vm443_vm1, %v333_v21, 0.0  ;;  %2702 = vmatprep.subr.bf16.mxu1 %v3115_v23  ;;  %v268_v31 = vmul.f32 %v3400_v15, %v3571_v6  ;;  %v3680_v20 = vld [vmem:[%s3387_s6 + $0xb8] sm:$0x3] }
  0x39   : > { %v619_v34 = vrot.slane %v617_v24, 1  ;;  %v3619_v36 = vpack.c.bf16 %v532_v26, %v531_v28  ;;  %v3621_v38 = vpack.c.bf16 %v533_v30, %v533_v30  ;;  %v269_v39 = vmul.f32 %v3400_v15, %v232_v12 }
  0x3a   : > { %v624_v41 = vrot.slane %v622_v37, 1  ;;  %v304_v43 = vadd.f32 %v3405_v16, %v267_v29  ;;  %v305_v44 = vadd.f32 %v3405_v16, %v268_v31  ;;  %v354_v45 = vadd.s32 5, %v3373_v7  ;;  %v3699_v37 = vld [vmem:[%s3387_s6 + $0xb0] sm:$0xff] }
  0x3b   : > { %2797 = vmatpush3.bf16.msra.mxu0 %v3111_v60  ;;  %v620_v48 = vor.u32 %v619_v34, %v615_v22  ;;  %v627_v49 = vshrl.u32 %v3619_v36, 16  ;;  %v629_v50 = vshll.u32 %v3619_v36, 16  ;;  %v634_v51 = vshll.u32 %v3621_v38, 16  ;;  %2703 = vmatpush3.bf16.msra.mxu1 %v3115_v23  ;;  %v3658_v23 = vld [vmem:[%s4179_s3 + $0xc0] sm:$0xff]  }
  0x3c   : > { %2798 = vmatprep.subr.bf16.mxu0 %v3113_v25  ;;  %v306_v56 = vadd.f32 %v3405_v16, %v269_v39  ;;  %v334_v57 = vmax.f32 %v304_v43, 0.0  ;;  %v335_v58 = vmax.f32 %v305_v44, 0.0  ;;  %vm368_vm5 = vcmp.ge.s32.totalorder %v354_v45, 1  ;;  %2704 = vmatprep.subr.bf16.mxu1 %v3117_v32 }
  0x3d   : > { %v3649_v60 = vsel %vm577_vm8, %v620_v48, %v624_v41  ;;  %v631_v61 = vrot.slane %v629_v50, 1  ;;  %v636_v62 = vrot.slane %v634_v51, 1  ;;  %vm378_vm6 = vcmp.le.s32.totalorder %v354_v45, 16 }
  0x3e   : > { %2782 = vmatprep.mubr.msk.bf16.mxu0 %vm707_vm10, %v3649_v60  ;;  %2687 = vmatmul.mubr.msk.bf16.gmra.mrb[4].mxu1 %vm707_vm10, %v3649_v60  ;;  %v336_v63 = vmax.f32 %v306_v56, 0.0  ;;  %vm388_vm7 = vmand %vm368_vm5, %vm378_vm6  ;;  %v989_v27 = vrot.slane %v3524_v35, 1  ;;  %v270_v0 = vmul.f32 %v3400_v15, %v3631_v46  ;;  %v271_v1 = vmul.f32 %v3400_v15, %v3640_v55 }
  0x3f   : > { %v632_v2 = vor.u32 %v631_v61, %v627_v49  ;;  %2799 = vmatpush3.bf16.msra.mxu0 %v3113_v25  ;;  %vm411_vm9 = vmand %vm388_vm7, %vm393_vm2  ;;  %v535_v3 = vsel %vm388_vm7, %v335_v58, 0.0  ;;  %v272_v4 = vmul.f32 %v3400_v15, %v3634_v47  ;;  %v355_v5 = vadd.s32 6, %v3373_v7  ;;  %2705 = vmatpush3.bf16.msra.mxu1 %v3117_v32  ;;  %v3690_v25 = vld [vmem:[%s3387_s6 + $0xa8] sm:$0xff] }
  0x40   : > { %2800 = vmatprep.subr.bf16.mxu0 %v3114_v42  ;;  %vm446_vm11 = vmand %vm388_vm7, %vm428_vm4  ;;  %v534_v12 = vsel %vm411_vm9, %v334_v57, 0.0  ;;  %v3675_v14 = vsel %vm982_vm3, %v989_v27, %v990_v52  ;;  %v307_v18 = vadd.f32 %v3405_v16, %v270_v0  ;;  %v308_v19 = vadd.f32 %v3405_v16, %v271_v1  ;;  %2722 = vmatprep.subr.bf16.mxu1 %v3646_v59 }
  0x41   : > { %v3684_v21 = vsel %vm577_vm8, %v632_v2, %v636_v62  ;;  %v536_v22 = vsel %vm446_vm11, %v336_v63, 0.0  ;;  %v3686_v24 = vpack.c.bf16 %v535_v3, %v534_v12  ;;  %v309_v40 = vadd.f32 %v3405_v16, %v272_v4  ;;  %v3118_v62 = vld [vmem:[%s4179_s3 + $0xc8] sm:$0xff]  }
  0x42   : > { %2783 = vmatmul.mubr.msk.bf16.gmra.mrb[4].mxu0 %vm707_vm10, %v3684_v21  ;;  %2690 = vmatprep.mubr.msk.bf16.mxu1 %vm707_vm10, %v3684_v21  ;;  %v3696_v52 = vpack.c.bf16 %v536_v22, %v536_v22  ;;  %v337_v28 = vmax.f32 %v307_v18, 0.0  ;;  %v338_v29 = vmax.f32 %v308_v19, 0.0  ;;  %vm369_vm12 = vcmp.ge.s32.totalorder %v355_v5, 1  ;;  %v3120_v19 = vld [vmem:[%s4179_s3 + $0xd0] sm:$0xff]   ;;  %v3747_v22 = vld [vmem:[%s3387_s6 + $0xc8] sm:$0xff] }
  0x43   : > { %2801 = vmatpush3.bf16.msra.mxu0 %v3114_v42  ;;  %2802 = vmatprep.mubr.msk.bf16.mxu0 %vm707_vm10, %v3598_v33  ;;  %v639_v26 = vshrl.u32 %v3686_v24, 16  ;;  %v641_v30 = vshll.u32 %v3686_v24, 16  ;;  %v339_v31 = vmax.f32 %v309_v40, 0.0  ;;  %vm379_vm13 = vcmp.le.s32.totalorder %v355_v5, 16  ;;  %v3737_v5 = vld [vmem:[%s3387_s6 + $0xc0] sm:$0xff] }
  0x44   : > { %2818 = vmatprep.subr.bf16.mxu0 %v3658_v23  ;;  %v646_v32 = vshll.u32 %v3696_v52, 16  ;;  %vm389_vm14 = vmand %vm369_vm12, %vm379_vm13  ;;  %v992_v34 = vrot.slane %v3577_v17, 1  ;;  %v993_v39 = vrot.slane %v3591_v10, 1  ;;  %v273_v41 = vmul.f32 %v3400_v15, %v3690_v25 }
  0x45   : > { %v643_v42 = vrot.slane %v641_v30, 1  ;;  %vm414_vm15 = vmand %vm389_vm14, %vm393_vm2  ;;  %v538_v43 = vsel %vm389_vm14, %v338_v29, 0.0  ;;  %v274_v44 = vmul.f32 %v3400_v15, %v3699_v37  ;;  %v275_v45 = vmul.f32 %v3400_v15, %v3680_v20  ;;  %v3756_v30 = vld [vmem:[%s3387_s6 + $0xd0] sm:$0x3] }
  0x46   : > { %v648_v48 = vrot.slane %v646_v32, 1  ;;  %vm449_vm0 = vmand %vm389_vm14, %vm428_vm4  ;;  %v537_v49 = vsel %vm414_vm15, %v337_v28, 0.0  ;;  %v3720_v10 = vsel %vm982_vm3, %v992_v34, %v993_v39  ;;  %v310_v50 = vadd.f32 %v3405_v16, %v273_v41 }
  0x47   : > { %v644_v51 = vor.u32 %v643_v42, %v639_v26  ;;  %v539_v56 = vsel %vm449_vm0, %v339_v31, 0.0  ;;  %v3723_v57 = vpack.c.bf16 %v538_v43, %v537_v49  ;;  %v311_v58 = vadd.f32 %v3405_v16, %v274_v44 }
  0x48   : > { %v562_v61 = vpack.c.bf16 %v539_v56, %v539_v56  ;;  %v312_v63 = vadd.f32 %v3405_v16, %v275_v45  ;;  %v340_v27 = vmax.f32 %v310_v50, 0.0  ;;  %v356_v0 = vadd.s32 7, %v3373_v7 }
  0x49   : > { %v3732_v1 = vsel %vm577_vm8, %v644_v51, %v648_v48  ;;  %v651_v2 = vshrl.u32 %v3723_v57, 16  ;;  %v653_v3 = vshll.u32 %v3723_v57, 16  ;;  %v341_v4 = vmax.f32 %v311_v58, 0.0 }
  0x4a   : > { %2691 = vmatmul.mubr.msk.bf16.gmra.mrb[8].mxu1 %vm707_vm10, %v3732_v1  ;;  %2803 = vmatmul.mubr.msk.bf16.vlgmr.msra.gmra.mrb[0].mxu0 %vm707_vm10, %v3675_v14  ;;  %v658_v12 = vshll.u32 %v562_v61, 16  ;;  %v342_v18 = vmax.f32 %v312_v63, 0.0  ;;  %vm370_vm1 = vcmp.ge.s32.totalorder %v356_v0, 1  ;;  %vm380_vm5 = vcmp.le.s32.totalorder %v356_v0, 16 }
  0x4b   : > { %2819 = vmatpush3.bf16.msra.mxu0 %v3658_v23  ;;  %v655_v40 = vrot.slane %v653_v3, 1  ;;  %2806 = vmatprep.mubr.msk.bf16.mxu0 %vm707_vm10, %v3720_v10  ;;  %vm390_vm6 = vmand %vm370_vm1, %vm380_vm5  ;;  %v995_v28 = vrot.slane %v3619_v36, 1  ;;  %v996_v29 = vrot.slane %v3621_v38, 1  ;;  %v998_v26 = vrot.slane %v3686_v24, 1 }
  0x4c   : > { %v660_v31 = vrot.slane %v658_v12, 1  ;;  %2820 = vmatprep.subr.bf16.mxu0 %v3118_v62  ;;  %vm417_vm7 = vmand %vm390_vm6, %vm393_vm2  ;;  %v541_v32 = vsel %vm390_vm6, %v341_v4, 0.0  ;;  %v999_v23 = vrot.slane %v3696_v52, 1  ;;  %v1001_v34 = vrot.slane %v3723_v57, 1 }
  0x4d   : > { %v656_v39 = vor.u32 %v655_v40, %v651_v2  ;;  %vm452_vm9 = vmand %vm390_vm6, %vm428_vm4  ;;  %v540_v41 = vsel %vm417_vm7, %v340_v27, 0.0  ;;  %v1002_v38 = vrot.slane %v562_v61, 1  ;;  %v3767_v44 = vsel %vm982_vm3, %v995_v28, %v996_v29  ;;  %v3122_v61 = vld [vmem:[%s4179_s3 + $0xd8] sm:$0xff]   ;;  %v243_v28 = vld [vmem:[%s3387_s6 + $0xe0] sm:$0xff] }
  0x4e   : > { %v542_v42 = vsel %vm452_vm9, %v342_v18, 0.0  ;;  %v3764_v43 = vpack.c.bf16 %v541_v32, %v540_v41  ;;  %v276_v45 = vmul.f32 %v3400_v15, %v3737_v5  ;;  %v3775_v49 = vsel %vm982_vm3, %v998_v26, %v999_v23  ;;  %v242_v40 = vld [vmem:[%s3387_s6 + $0xd8] sm:$0xff]  ;;  %v244_v23 = vld [vmem:[%s3387_s6 + $0xe8] sm:$0x3]  ;;  %v3807_v41 = vld [vmem:[%s4179_s3 + $0xe0] sm:$0xff]  }
  0x4f   : > { %v3772_v48 = vsel %vm577_vm8, %v656_v39, %v660_v31  ;;  %v564_v52 = vpack.c.bf16 %v542_v42, %v542_v42  ;;  %2821 = vmatpush3.bf16.msra.mxu0 %v3118_v62  ;;  %v277_v50 = vmul.f32 %v3400_v15, %v3747_v22  ;;  %v3784_v58 = vsel %vm982_vm3, %v1001_v34, %v1002_v38 }
  0x50   : > { %2694 = vmatprep.mubr.msk.bf16.mxu1 %vm707_vm10, %v3772_v48  ;;  %v663_v51 = vshrl.u32 %v3764_v43, 16  ;;  %v665_v56 = vshll.u32 %v3764_v43, 16  ;;  %2822 = vmatprep.subr.bf16.mxu0 %v3120_v19  ;;  %v278_v62 = vmul.f32 %v3400_v15, %v3756_v30  ;;  %v1004_v27 = vrot.slane %v3764_v43, 1 }
  0x51   : > { %v670_v63 = vshll.u32 %v564_v52, 16  ;;  %v313_v0 = vadd.f32 %v3405_v16, %v276_v45  ;;  %v314_v2 = vadd.f32 %v3405_v16, %v277_v50  ;;  %v1005_v4 = vrot.slane %v564_v52, 1 }
  0x52   : > { %v667_v3 = vrot.slane %v665_v56, 1  ;;  %2807 = vmatmul.mubr.msk.bf16.gmra.mrb[4].mxu0 %vm707_vm10, %v3767_v44  ;;  %v315_v12 = vadd.f32 %v3405_v16, %v278_v62  ;;  %v357_v18 = vadd.s32 8, %v3373_v7  ;;  %v983_v32 = vrot.slane %v3485_v53, 1 }
  0x53   : > { %v672_v29 = vrot.slane %v670_v63, 1  ;;  %2810 = vmatprep.mubr.msk.bf16.mxu0 %vm707_vm10, %v3775_v49  ;;  %2823 = vmatpush3.bf16.msra.mxu0 %v3120_v19  ;;  %v343_v26 = vmax.f32 %v313_v0, 0.0  ;;  %v344_v31 = vmax.f32 %v314_v2, 0.0  ;;  %v984_v38 = vrot.slane %v3487_v54, 1 }
  0x54   : > { %v668_v34 = vor.u32 %v667_v3, %v663_v51  ;;  %2824 = vmatprep.subr.bf16.mxu0 %v3122_v61  ;;  %v345_v39 = vmax.f32 %v315_v12, 0.0  ;;  %vm371_vm11 = vcmp.ge.s32.totalorder %v357_v18, 1  ;;  %vm381_vm12 = vcmp.le.s32.totalorder %v357_v18, 16 }
  0x55   : > { %vm391_vm13 = vmand %vm371_vm11, %vm381_vm12  ;;  %v279_v19 = vmul.f32 %v3400_v15, %v242_v40  ;;  %v280_v42 = vmul.f32 %v3400_v15, %v243_v28  ;;  %v358_v45 = vadd.s32 9, %v3373_v7  ;;  %v3817_v50 = vsel %vm982_vm3, %v1004_v27, %v1005_v4  ;;  %v3121_v28 = vld [vmem:[%s4179_s3 + $0x48] sm:$0xff]  }
  0x56   : > { %v3814_v52 = vsel %vm577_vm8, %v668_v34, %v672_v29  ;;  %vm420_vm14 = vmand %vm391_vm13, %vm393_vm2  ;;  %v544_v51 = vsel %vm391_vm13, %v344_v31, 0.0  ;;  %v281_v56 = vmul.f32 %v3400_v15, %v244_v23  ;;  %v3827_v7 = vsel %vm982_vm3, %v983_v32, %v984_v38  ;;  %v3123_v34 = vld [vmem:[%s4179_s3 + $0x50] sm:$0xff]  }
  0x57   : > { %2695 = vmatmul.mubr.msk.bf16.gmra.mrb[12].mxu1 %vm707_vm10, %v3814_v52  ;;  %vm455_vm15 = vmand %vm391_vm13, %vm428_vm4  ;;  %v543_v54 = vsel %vm420_vm14, %v343_v26, 0.0  ;;  %2825 = vmatpush3.bf16.msra.mxu0 %v3122_v61  ;;  %v316_v62 = vadd.f32 %v3405_v16, %v279_v19  ;;  %v317_v63 = vadd.f32 %v3405_v16, %v280_v42  ;;  %vm372_vm0 = vcmp.ge.s32.totalorder %v358_v45, 1 }
  0x58   : > { %2706 = vmatprep.mubr.msk.bf16.mxu1 %vm707_vm10, %v3485_v53  ;;  %v545_v27 = vsel %vm455_vm15, %v345_v39, 0.0  ;;  %v3833_v15 = vpack.c.bf16 %v544_v51, %v543_v54  ;;  %2842 = vmatprep.subr.bf16.mxu0 %v3807_v41  ;;  %vm382_vm1 = vcmp.le.s32.totalorder %v358_v45, 16  ;;  %v318_v3 = vadd.f32 %v3405_v16, %v281_v56  ;;  %v3125_v45 = vld [vmem:[%s4179_s3 + $0x58] sm:$0xff]   ;;  %v3126_v56 = vld [vmem:[%s4179_s3 + $0xe8] sm:$0xff]   ;;  %v3127_v54 = vld [vmem:[%s4179_s3 + $0x60] sm:$0xff]  }
  0x59   : > { %v3836_v0 = vpack.c.bf16 %v545_v27, %v545_v27  ;;  %v346_v61 = vmax.f32 %v316_v62, 0.0  ;;  %v347_v2 = vmax.f32 %v317_v63, 0.0  ;;  %vm392_vm5 = vmand %vm372_vm0, %vm382_vm1  ;;  %v3128_v62 = vld [vmem:[%s4179_s3 + $0xf0] sm:$0xff]   ;;  %v3132_v63 = vld [vmem:[%s4179_s3 + $0x100] sm:$0xff]  }
  0x5a   : > { %2811 = vmatmul.mubr.msk.bf16.gmra.mrb[8].mxu0 %vm707_vm10, %v3784_v58  ;;  %vm423_vm6 = vmand %vm392_vm5, %vm393_vm2  ;;  %v1488_v53 = vrot.slane %v3833_v15, 1  ;;  %v348_v16 = vmax.f32 %v318_v3, 0.0  ;;  %v3129_v27 = vld [vmem:[%s4179_s3 + $0x68] sm:$0xff]   ;;  %v3137_v3 = vld [vmem:[%s4179_s3 + $0x80] sm:$0xff]  }
  0x5b   : > { %2814 = vmatprep.mubr.msk.bf16.mxu0 %vm707_vm10, %v3817_v50  ;;  %v1489_v4 = vrot.slane %v3836_v0, 1  ;;  %v546_v12 = vsel %vm423_vm6, %v346_v61, 0.0  ;;  %v547_v18 = vsel %vm392_vm5, %v347_v2, 0.0  ;;  %vm458_vm7 = vmand %vm392_vm5, %vm428_vm4  ;;  %v3134_v61 = vld [vmem:[%s4179_s3 + $0x108] sm:$0xff]   ;;  %v1328_v2 = vshll.u32 %v3833_v15, 16 }
  0x5c   : > { %v567_v40 = vpack.c.bf16 %v547_v18, %v546_v12  ;;  %v548_v8 = vsel %vm458_vm7, %v348_v16, 0.0 }
  0x5d   : > { %v3855_v31 = vsel %vm982_vm3, %v1488_v53, %v1489_v4  ;;  %v568_v32 = vpack.c.bf16 %v548_v8, %v548_v8  ;;  %v1333_v53 = vshll.u32 %v3836_v0, 16  ;;  %v3136_v4 = vld [vmem:[%s4179_s3 + $0x118] sm:$0xff]  }
  0x5e   : > { %v1789_v29 = vshrl.u32 %v567_v40, 16  ;;  %v1791_v26 = vshll.u32 %v567_v40, 16  ;;  %v1951_v23 = vrot.slane %v567_v40, 1 }
  0x5f   : > { %2707 = vmatmul.mubr.msk.bf16.vlgmr.msra.gmra.mrb[0].mxu1 %vm707_vm10, %v3503_v9  ;;  %v1796_v39 = vshll.u32 %v568_v32, 16  ;;  %v1952_v38 = vrot.slane %v568_v32, 1  ;;  %v1335_v18 = vrot.slane %v1333_v53, 1 }
  0x60   : > { %2723 = vmatpush3.bf16.msra.mxu1 %v3646_v59  ;;  %2710 = vmatprep.mubr.msk.bf16.mxu1 %vm707_vm10, %v3524_v35  ;;  %v1793_v11 = vrot.slane %v1791_v26, 1 }
  0x61   : > { %2724 = vmatprep.subr.bf16.mxu1 %v3121_v28  ;;  %v1798_v42 = vrot.slane %v1796_v39, 1  ;;  %v3868_v59 = vsel %vm982_vm3, %v1951_v23, %v1952_v38 }
  0x62   : > { %2815 = vmatmul.mubr.msk.bf16.gmra.mrb[12].mxu0 %vm707_vm10, %v3855_v31  ;;  %v1794_v19 = vor.u32 %v1793_v11, %v1789_v29 }
  0x63   : > { %2826 = vmatprep.mubr.msk.bf16.mxu0 %vm707_vm10, %v3524_v35 }
  0x64   : > { %2725 = vmatpush3.bf16.msra.mxu1 %v3121_v28  ;;  %v3874_v51 = vsel %vm577_vm8, %v1794_v19, %v1798_v42 }
  0x65   : > { %2726 = vmatprep.subr.bf16.mxu1 %v3123_v34 }
  0x67   : > { %2711 = vmatmul.mubr.msk.bf16.gmra.mrb[4].mxu1 %vm707_vm10, %v3577_v17 }
  0x68   : > { %2714 = vmatprep.mubr.msk.bf16.mxu1 %vm707_vm10, %v3619_v36  ;;  %2727 = vmatpush3.bf16.msra.mxu1 %v3123_v34 }
  0x69   : > { %2728 = vmatprep.subr.bf16.mxu1 %v3125_v45 }
  0x6a   : > { %2827 = vmatmul.mubr.msk.bf16.vlgmr.msra.gmra.mrb[0].mxu0 %vm707_vm10, %v3577_v17 }
  0x6b   : > { %2843 = vmatpush3.bf16.msra.mxu0 %v3807_v41  ;;  %2830 = vmatprep.mubr.msk.bf16.mxu0 %vm707_vm10, %v3619_v36  ;;  %v3130_v41 = vld [vmem:[%s4179_s3 + $0xf8] sm:$0xff]  }
  0x6c   : > { %2844 = vmatprep.subr.bf16.mxu0 %v3126_v56  ;;  %2729 = vmatpush3.bf16.msra.mxu1 %v3125_v45 }
  0x6d   : > { %2746 = vmatprep.subr.bf16.mxu1 %v3127_v54 }
  0x6f   : > { %2715 = vmatmul.mubr.msk.bf16.gmra.mrb[8].mxu1 %vm707_vm10, %v3686_v24  ;;  %2845 = vmatpush3.bf16.msra.mxu0 %v3126_v56 }
  0x70   : > { %2718 = vmatprep.mubr.msk.bf16.mxu1 %vm707_vm10, %v3723_v57  ;;  %2846 = vmatprep.subr.bf16.mxu0 %v3128_v62 }
  0x72   : > { %2831 = vmatmul.mubr.msk.bf16.gmra.mrb[4].mxu0 %vm707_vm10, %v3686_v24 }
  0x73   : > { %2834 = vmatprep.mubr.msk.bf16.mxu0 %vm707_vm10, %v3723_v57  ;;  %2847 = vmatpush3.bf16.msra.mxu0 %v3128_v62 }
  0x74   : > { %2848 = vmatprep.subr.bf16.mxu0 %v3130_v41 }
  0x77   : > { %2719 = vmatmul.mubr.msk.bf16.gmra.mrb[12].mxu1 %vm707_vm10, %v3764_v43  ;;  %2849 = vmatpush3.bf16.msra.mxu0 %v3130_v41 }
  0x78   : > { %2730 = vmatprep.mubr.msk.bf16.mxu1 %vm707_vm10, %v3827_v7  ;;  %2866 = vmatprep.subr.bf16.mxu0 %v3132_v63  ;;  %v3131_v7 = vld [vmem:[%s4179_s3 + $0x70] sm:$0xff]  }
  0x7a   : > { %2835 = vmatmul.mubr.msk.bf16.gmra.mrb[8].mxu0 %vm707_vm10, %v3764_v43 }
  0x7b   : > { %2838 = vmatprep.mubr.msk.bf16.mxu0 %vm707_vm10, %v3833_v15 }
  0x7f   : > { %2731 = vmatmul.mubr.msk.bf16.vlgmr.msra.gmra.mrb[0].mxu1 %vm707_vm10, %v3598_v33  ;;  %v3133_v33 = vld [vmem:[%s4179_s3 + $0x78] sm:$0xff]  }
  0x80   : > { %2747 = vmatpush3.bf16.msra.mxu1 %v3127_v54  ;;  %2734 = vmatprep.mubr.msk.bf16.mxu1 %vm707_vm10, %v3675_v14 }
  0x81   : > { %2748 = vmatprep.subr.bf16.mxu1 %v3129_v27 }
  0x82   : > { %2839 = vmatmul.mubr.msk.bf16.gmra.mrb[12].mxu0 %vm707_vm10, %v567_v40  ;;  %v3138_v40 = vld [vmem:[%s4179_s3 + $0x88] sm:$0xff]  }
  0x83   : > { %2850 = vmatprep.mubr.msk.bf16.mxu0 %vm707_vm10, %v3575_v13  ;;  %v3135_v13 = vld [vmem:[%s4179_s3 + $0x110] sm:$0xff]  }
  0x84   : > { %2749 = vmatpush3.bf16.msra.mxu1 %v3129_v27 }
  0x85   : > { %2750 = vmatprep.subr.bf16.mxu1 %v3131_v7 }
  0x87   : > { %2735 = vmatmul.mubr.msk.bf16.gmra.mrb[4].mxu1 %vm707_vm10, %v3720_v10 }
  0x88   : > { %2738 = vmatprep.mubr.msk.bf16.mxu1 %vm707_vm10, %v3767_v44  ;;  %2751 = vmatpush3.bf16.msra.mxu1 %v3131_v7 }
  0x89   : > { %2752 = vmatprep.subr.bf16.mxu1 %v3133_v33 }
  0x8a   : > { %2851 = vmatmul.mubr.msk.bf16.vlgmr.msra.gmra.mrb[0].mxu0 %vm707_vm10, %v3649_v60  ;;  %v1326_v60 = vshrl.u32 %v3833_v15, 16 }
  0x8b   : > { %2867 = vmatpush3.bf16.msra.mxu0 %v3132_v63  ;;  %2854 = vmatprep.mubr.msk.bf16.mxu0 %vm707_vm10, %v3684_v21  ;;  %v1330_v21 = vrot.slane %v1328_v2, 1 }
  0x8c   : > { %2868 = vmatprep.subr.bf16.mxu0 %v3134_v61  ;;  %2753 = vmatpush3.bf16.msra.mxu1 %v3133_v33 }
  0x8d   : > { %2890 = vmatprep.subr.bf16.mxu1 %v3137_v3  ;;  %v1331_v12 = vor.u32 %v1330_v21, %v1326_v60 }
  0x8f   : > { %2739 = vmatmul.mubr.msk.bf16.gmra.mrb[8].mxu1 %vm707_vm10, %v3775_v49  ;;  %2869 = vmatpush3.bf16.msra.mxu0 %v3134_v61  ;;  %v1336_v0 = vsel %vm577_vm8, %v1331_v12, %v1335_v18  ;;  %v3141_v12 = vld [vmem:[%s3387_s6 + $0x30] sm:$0xff] }
  0x90   : > { %2742 = vmatprep.mubr.msk.bf16.mxu1 %vm707_vm10, %v3784_v58  ;;  %2870 = vmatprep.subr.bf16.mxu0 %v3135_v13  ;;  %v2133_v18 = vrot.slane %v3141_v12, 1  ;;  %v2149_v12 = vrot.slane %v3571_v6, 1  ;;  %v2159_v6 = vrot.slane %v3699_v37, 1  ;;  %v2163_v37 = vrot.slane %v3737_v5, 1 }
  0x92   : > { %2855 = vmatmul.mubr.msk.bf16.gmra.mrb[4].mxu0 %vm707_vm10, %v3732_v1 }
  0x93   : > { %2858 = vmatprep.mubr.msk.bf16.mxu0 %vm707_vm10, %v3772_v48  ;;  %2871 = vmatpush3.bf16.msra.mxu0 %v3135_v13 }
  0x94   : > { %2872 = vmatprep.subr.bf16.mxu0 %v3136_v4 }
  0x97   : > { %2743 = vmatmul.mubr.msk.bf16.gmra.mrb[12].mxu1 %vm707_vm10, %v3817_v50  ;;  %2873 = vmatpush3.bf16.msra.mxu0 %v3136_v4 }
  0x98   : > { %2754 = vmatprep.mubr.msk.bf16.mxu1 %vm707_vm10, %v3503_v9  ;;  %v3139_v9 = vld [vmem:[%s4179_s3 + $0x90] sm:$0xff]  }
  0x9a   : > { %2859 = vmatmul.mubr.msk.bf16.gmra.mrb[8].mxu0 %vm707_vm10, %v3814_v52 }
  0x9b   : > { %2862 = vmatprep.mubr.msk.bf16.mxu0 %vm707_vm10, %v1336_v0 }
  0x9f   : > { %2755 = vmatmul.mubr.msk.bf16.vlgmr.msra.gmra.mrb[0].mxu1 %vm707_vm10, %v3524_v35  ;;  %v3140_v35 = vld [vmem:[%s4179_s3 + $0x98] sm:$0xff]  }
  0xa0   : > { %2894 = vmatpush3.bf16.msra.mxu1 %v3137_v3  ;;  %2758 = vmatprep.mubr.msk.bf16.mxu1 %vm707_vm10, %v3577_v17 }
  0xa1   : > { %2891 = vmatprep.subr.bf16.mxu1 %v3138_v40 }
  0xa2   : > { %2863 = vmatmul.mubr.msk.bf16.gmra.mrb[12].mxu0 %vm707_vm10, %v3874_v51 }
  0xa3   : > { %2874 = vmatprep.mubr.msk.bf16.mxu0 %vm707_vm10, %v3675_v14 }
  0xa4   : > { %2895 = vmatpush3.bf16.msra.mxu1 %v3138_v40 }
  0xa5   : > { %2892 = vmatprep.subr.bf16.mxu1 %v3139_v9 }
  0xa7   : > { %2759 = vmatmul.mubr.msk.bf16.gmra.mrb[4].mxu1 %vm707_vm10, %v3619_v36 }
  0xa8   : > { %2762 = vmatprep.mubr.msk.bf16.mxu1 %vm707_vm10, %v3686_v24  ;;  %2896 = vmatpush3.bf16.msra.mxu1 %v3139_v9  ;;  %v3143_v9 = vld [vmem:[%s3387_s6 + $0x18] sm:$0xff] }
  0xa9   : > { %2893 = vmatprep.subr.bf16.mxu1 %v3140_v35 }
  0xaa   : > { %2875 = vmatmul.mubr.msk.bf16.vlgmr.msra.gmra.mrb[0].mxu0 %vm707_vm10, %v3720_v10 }
  0xab   : > { %2878 = vmatprep.mubr.msk.bf16.mxu0 %vm707_vm10, %v3767_v44 }
  0xac   : > { %2897 = vmatpush3.bf16.msra.mxu1 %v3140_v35  ;;  %v2128_v35 = vrot.slane %v3143_v9, 1 }
  0xaf   : > { %2763 = vmatmul.mubr.msk.bf16.gmra.mrb[8].mxu1 %vm707_vm10, %v3723_v57 }
  0xb0   : > { %2766 = vmatprep.mubr.msk.bf16.mxu1 %vm707_vm10, %v3764_v43 }
  0xb2   : > { %2879 = vmatmul.mubr.msk.bf16.gmra.mrb[4].mxu0 %vm707_vm10, %v3775_v49 }
  0xb3   : > { %2882 = vmatprep.mubr.msk.bf16.mxu0 %vm707_vm10, %v3784_v58 }
  0xb7   : > { %2767 = vmatmul.mubr.msk.bf16.gmra.mrb[12].mxu1 %vm707_vm10, %v3833_v15 }
  0xb8   : > { %2786 = vmatprep.mubr.msk.bf16.mxu1 %vm707_vm10, %v3732_v1 }
  0xba   : > { %2883 = vmatmul.mubr.msk.bf16.gmra.mrb[8].mxu0 %vm707_vm10, %v3817_v50 }
  0xbb   : > { %2886 = vmatprep.mubr.msk.bf16.mxu0 %vm707_vm10, %v3855_v31 }
  0xbf   : > { %2787 = vmatmul.mubr.msk.bf16.vlgmr.msra.gmra.mrb[8].mxu1 %vm707_vm10, %v3772_v48 }
  0xc0   : > { %2790 = vmatprep.mubr.msk.bf16.mxu1 %vm707_vm10, %v3814_v52 }
  0xc2   : > { %2887 = vmatmul.mubr.msk.bf16.gmra.mrb[12].mxu0 %vm707_vm10, %v3868_v59 }
  0xc7   : > { %2791 = vmatmul.mubr.msk.bf16.gmra.mrb[12].mxu1 %vm707_vm10, %v1336_v0  ;;  %v3142_v0 = vld [vmem:[%s3387_s6 + $0x38] sm:$0xff] }
  0xc8   : > { %v2134_v40 = vrot.slane %v3142_v0, 1 }
 0x172   : > { %v2756_v17 = vpop.f32.mrb[0].mxu1 }
 0x173   : > { %v1247_v36 = vpop.f32.mrb[1].mxu1 }
 0x174   : > { %v2757_v14 = vpop.f32.mrb[2].mxu1 }
 0x175   : > { %v1250_v24 = vpop.f32.mrb[3].mxu1 }
 0x17a   : > { %v2760_v10 = vpop.f32.mrb[4].mxu1 }
 0x17b   : > { %v1263_v57 = vpop.f32.mrb[5].mxu1 }
 0x17c   : > { %v2761_v1 = vpop.f32.mrb[6].mxu1 }
 0x17d   : > { %v1266_v43 = vpop.f32.mrb[7].mxu1  ;;  %v2876_v44 = vpop.f32.mrb[0].mxu0 }
 0x17e   : > { %v2898_v49 = vadd.f32 %v2876_v44, %v2756_v17  ;;  %v2024_v58 = vpop.f32.mrb[1].mxu0  ;;  %v3144_v17 = vld [vmem:[%s3387_s6 + $0x20] sm:$0xff] }
 0x17f   : > { %v2899_v48 = vadd.f32 %v2024_v58, %v1247_v36  ;;  %v2877_v50 = vpop.f32.mrb[2].mxu0  ;;  %v2129_v36 = vrot.slane %v3144_v17, 1  ;;  %v2158_v17 = vrot.slane %v3690_v25, 1 }
 0x180   : > { %v2900_v15 = vadd.f32 %v2877_v50, %v2757_v14  ;;  %v2027_v52 = vpop.f32.mrb[3].mxu0  ;;  %2204 = vrot.lane.b32.xlu1 %v2898_v49, %s3251_s24  ;;  %v2135_v14 = vsel %vm982_vm3, %v2133_v18, %v2134_v40 }
 0x181   : > { %v2901_v16 = vadd.f32 %v2027_v52, %v1250_v24  ;;  %2200 = vrot.lane.b32.xlu0 %v2899_v48, %s3251_s24  ;;  %v3145_v24 = vld [vmem:[%s3387_s6 + $0x40] sm:$0x3]  ;;  %v2160_v25 = vsel %vm982_vm3, %v2158_v17, %v2159_v6 }
 0x182   : > { %v3147_v52 = vld [vmem:[%s3387_s6 + $0x60] sm:$0xff] }
 0x184   : > { %2206 = vrot.lane.b32.xlu1 %v2900_v15, %s3251_s24 }
 0x185   : > { %v2880_v28 = vpop.f32.mrb[4].mxu0  ;;  %2202 = vrot.lane.b32.xlu0 %v2901_v16, %s3251_s24  ;;  %v2143_v16 = vrot.slane %v3147_v52, 1 }
 0x186   : > { %v2902_v8 = vadd.f32 %v2880_v28, %v2760_v10  ;;  %v2040_v29 = vpop.f32.mrb[5].mxu0  ;;  %v2136_v10 = vrot.slane %v3145_v24, 1  ;;  %v3148_v28 = vld [vmem:[%s3387_s6 + $0x68] sm:$0xff] }
 0x187   : > { %v2903_v26 = vadd.f32 %v2040_v29, %v1263_v57  ;;  %v2881_v31 = vpop.f32.mrb[6].mxu0  ;;  %v2130_v57 = vsel %vm982_vm3, %v2128_v35, %v2129_v36 }
 0x188   : > { %v2904_v32 = vadd.f32 %v2881_v31, %v2761_v1  ;;  %v2043_v23 = vpop.f32.mrb[7].mxu0  ;;  %v3146_v1 = vld [vmem:[%s3387_s6 + $0x28] sm:$0x3]  ;;  %v2137_v50 = vsel %vm982_vm3, %v2134_v40, %v2136_v10  ;;  %v2161_v10 = vrot.slane %v3680_v20, 1 }
 0x189   : > { %v2905_v11 = vadd.f32 %v2043_v23, %v1266_v43  ;;  %2212 = vrot.lane.b32.xlu0 %v2902_v8, %s3251_s24  ;;  %v2131_v43 = vrot.slane %v3146_v1, 1  ;;  %v2144_v8 = vrot.slane %v3148_v28, 1  ;;  %v3154_v40 = vld [vmem:[%s3387_s6 + $0x88] sm:$0x3] }
 0x18a   : > { %2214 = vrot.lane.b32.xlu1 %v2904_v32, %s3251_s24  ;;  %v2162_v20 = vsel %vm982_vm3, %v2159_v6, %v2161_v10 }
 0x18b   : > { %v2132_v15 = vsel %vm982_vm3, %v2129_v36, %v2131_v43  ;;  %v2164_v43 = vrot.slane %v3747_v22, 1 }
 0x18d   : > { %v2884_v34 = vpop.f32.mrb[8].mxu0  ;;  %2208 = vrot.lane.b32.xlu0 %v2903_v26, %s3251_s24  ;;  %v3149_v26 = vld [vmem:[%s3387_s6 + $0x70] sm:$0x3] }
 0x18e   : > { %v2056_v39 = vpop.f32.mrb[9].mxu0  ;;  %2210 = vrot.lane.b32.xlu1 %v2905_v11, %s3251_s24  ;;  %v2146_v31 = vrot.slane %v3149_v26, 1 }
 0x18f   : > { %v2885_v38 = vpop.f32.mrb[10].mxu0 }
 0x190   : > { %v2059_v19 = vpop.f32.mrb[11].mxu0 }
 0x192   : > { %v2788_v42 = vpop.f32.mrb[8].mxu1 }
 0x193   : > { %v2906_v59 = vadd.f32 %v2884_v34, %v2788_v42  ;;  %v1439_v45 = vpop.f32.mrb[9].mxu1  ;;  %v2145_v34 = vsel %vm982_vm3, %v2143_v16, %v2144_v8 }
 0x194   : > { %v2907_v51 = vadd.f32 %v2056_v39, %v1439_v45  ;;  %v2789_v56 = vpop.f32.mrb[10].mxu1  ;;  %v3150_v39 = vld [vmem:[%s3387_s6 + $0x48] sm:$0xff]  ;;  %v3152_v45 = vld [vmem:[%s3387_s6 + $0x58] sm:$0x3] }
 0x195   : > { %v2908_v54 = vadd.f32 %v2885_v38, %v2789_v56  ;;  %v1442_v62 = vpop.f32.mrb[11].mxu1  ;;  %2220 = vrot.lane.b32.xlu0 %v2906_v59, %s3251_s24  ;;  %v2888_v41 = vpop.f32.mrb[12].mxu0  ;;  %v2138_v38 = vrot.slane %v3150_v39, 1  ;;  %v2147_v59 = vsel %vm982_vm3, %v2144_v8, %v2146_v31 }
 0x196   : > { %v2909_v63 = vadd.f32 %v2059_v19, %v1442_v62  ;;  %v2072_v27 = vpop.f32.mrb[13].mxu0  ;;  %v3151_v19 = vld [vmem:[%s3387_s6 + $0x50] sm:$0xff] }
 0x197   : > { %2222 = vrot.lane.b32.xlu1 %v2908_v54, %s3251_s24  ;;  %v2889_v7 = vpop.f32.mrb[14].mxu0  ;;  %v2139_v42 = vrot.slane %v3151_v19, 1 }
 0x198   : > { %v2075_v33 = vpop.f32.mrb[15].mxu0 }
 0x199   : > { %2216 = vrot.lane.b32.xlu0 %v2907_v51, %s3251_s24  ;;  %v2141_v51 = vrot.slane %v3152_v45, 1 }
 0x19a   : > { %v2792_v61 = vpop.f32.mrb[12].mxu1 }
 0x19b   : > { %v2910_v13 = vadd.f32 %v2888_v41, %v2792_v61  ;;  %2218 = vrot.lane.b32.xlu1 %v2909_v63, %s3251_s24  ;;  %v1455_v2 = vpop.f32.mrb[13].mxu1  ;;  %v2140_v63 = vsel %vm982_vm3, %v2138_v38, %v2139_v42 }
 0x19c   : > { %v2911_v3 = vadd.f32 %v2072_v27, %v1455_v2  ;;  %v2793_v60 = vpop.f32.mrb[14].mxu1  ;;  %v2142_v27 = vsel %vm982_vm3, %v2139_v42, %v2141_v51  ;;  %v2153_v2 = vrot.slane %v3631_v46, 1  ;;  %v2151_v46 = vrot.slane %v3154_v40, 1 }
 0x19d   : > { %v2912_v21 = vadd.f32 %v2889_v7, %v2793_v60  ;;  %v1458_v53 = vpop.f32.mrb[15].mxu1  ;;  %v2156_v60 = vrot.slane %v3634_v47, 1 }
 0x19e   : > { %v2913_v4 = vadd.f32 %v2075_v33, %v1458_v53  ;;  %2224 = vrot.lane.b32.xlu0 %v2911_v3, %s3251_s24  ;;  %v2154_v3 = vrot.slane %v3640_v55, 1  ;;  %v3153_v53 = vld [vmem:[%s3387_s6 + $0x78] sm:$0xff]  ;;  %s2565_s6 = sshll.u32 %s3233_s18, 4 }
 0x19f   : > { %s2294_s30 = sadd.s32 %s2565_s6, %s2561_s12 }
 0x1a0   : > { %2226 = vrot.lane.b32.xlu1 %v2913_v4, %s3251_s24  ;;  %v2148_v4 = vrot.slane %v3153_v53, 1  ;;  %v2157_v0 = vsel %vm982_vm3, %v2154_v3, %v2156_v60  ;;  %s2562_s18 = sshll.u32 %s2294_s30, 7 }
 0x1a1   : > { %s4115_s10 = scalar_lea.hbm %s4180_s4, %s2562_s18 }
 0x1a2   : > { %2228 = vrot.lane.b32.xlu0 %v2910_v13, %s3251_s24  ;;  %v2150_v47 = vsel %vm982_vm3, %v2148_v4, %v2149_v12 }
 0x1a4   : > { %2230 = vrot.lane.b32.xlu1 %v2912_v21, %s3251_s24  ;;  %v2155_v21 = vsel %vm982_vm3, %v2153_v2, %v2154_v3  ;;  %s3159_s24 = sshll.u32 %s3252_s14, 4  ;;  %s3160_s24 = int_to_ptr.vmem [resolvable:$false] %s3159_s24 }
 0x1a5   : > { %s3161_s23 = scalar_lea.vmem %s3160_s24, 4096  ;;  %p3162_p2 = scmp.lt.s32.totalorder %s4117_s19, %s3160_s24 }
 0x1a6   : > { %p3163_p4 = scmp.lt.s32.totalorder %s3161_s23, %s3155_s13 }
 0x1a8   : > { %p3164_p5 = por %p3163_p4, %p3162_p2 }
 0x1aa   : > { %p3165_p6 = pnand %p3164_p5, %p3158_p1 }
 0x1f2   : > { %v2205_v44 = vpop.permute.xlu1 %2204 }
 0x1f3   : > { %v2250_v49 = vsel %vm707_vm10, %v2135_v14, %v2205_v44  ;;  %v2201_v58 = vpop.permute.xlu0 %2200  ;;  %v2152_v14 = vsel %vm982_vm3, %v2149_v12, %v2151_v46 }
 0x1f4   : > { %2266 = vst [vmem:[%s4047_s5 + $0x10] sm:$0xff] %v2250_v49  ;;  %v2248_v48 = vsel %vm707_vm10, %v2130_v57, %v2201_v58  ;;  %v2166_v49 = vrot.slane %v3756_v30, 1 }
 0x1f5   : > { %2264 = vst [vmem:[%s4047_s5] sm:$0xff] %v2248_v48 }
 0x1f6   : > { %v2207_v29 = vpop.permute.xlu1 %2206 }
 0x1f7   : > { %v2251_v32 = vsel %vm707_vm10, %v2137_v50, %v2207_v29  ;;  %v2203_v23 = vpop.permute.xlu0 %2202  ;;  %v2165_v50 = vsel %vm982_vm3, %v2163_v37, %v2164_v43 }
 0x1f8   : > { %2267 = vst [vmem:[%s4047_s5 + $0x18] sm:$0xff] %v2251_v32  ;;  %v2249_v11 = vsel %vm707_vm10, %v2132_v15, %v2203_v23  ;;  %v2167_v15 = vsel %vm982_vm3, %v2164_v43, %v2166_v49 }
 0x1f9   : > { %2265 = vst [vmem:[%s4047_s5 + $0x8] sm:$0xff] %v2249_v11 }
 0x1fb   : > { %v2213_v56 = vpop.permute.xlu0 %2212 }
 0x1fc   : > { %v2254_v54 = vsel %vm707_vm10, %v2145_v34, %v2213_v56  ;;  %v2215_v62 = vpop.permute.xlu1 %2214 }
 0x1fd   : > { %2270 = vst [vmem:[%s4047_s5 + $0x30] sm:$0xff] %v2254_v54  ;;  %v2255_v41 = vsel %vm707_vm10, %v2147_v59, %v2215_v62 }
 0x1fe   : > { %2271 = vst [vmem:[%s4047_s5 + $0x38] sm:$0xff] %v2255_v41 }
 0x1ff   : > { %v2209_v7 = vpop.permute.xlu0 %2208 }
 0x200   : > { %v2252_v33 = vsel %vm707_vm10, %v2140_v63, %v2209_v7  ;;  %v2211_v61 = vpop.permute.xlu1 %2210 }
 0x201   : > { %2268 = vst [vmem:[%s4047_s5 + $0x20] sm:$0xff] %v2252_v33  ;;  %v2253_v13 = vsel %vm707_vm10, %v2142_v27, %v2211_v61 }
 0x202   : > { %2269 = vst [vmem:[%s4047_s5 + $0x28] sm:$0xff] %v2253_v13 }
 0x207   : > { %v2221_v18 = vpop.permute.xlu0 %2220 }
 0x208   : > { %v2258_v55 = vsel %vm707_vm10, %v2155_v21, %v2221_v18 }
 0x209   : > { %2274 = vst [vmem:[%s4047_s5 + $0x50] sm:$0xff] %v2258_v55  ;;  %v2223_v9 = vpop.permute.xlu1 %2222 }
 0x20a   : > { %v2259_v35 = vsel %vm707_vm10, %v2157_v0, %v2223_v9 }
 0x20b   : > { %2275 = vst [vmem:[%s4047_s5 + $0x58] sm:$0xff] %v2259_v35  ;;  %v2217_v36 = vpop.permute.xlu0 %2216 }
 0x20c   : > { %v2256_v24 = vsel %vm707_vm10, %v2150_v47, %v2217_v36 }
 0x20d   : > { %2272 = vst [vmem:[%s4047_s5 + $0x40] sm:$0xff] %v2256_v24  ;;  %v2219_v57 = vpop.permute.xlu1 %2218 }
 0x20e   : > { %v2257_v1 = vsel %vm707_vm10, %v2152_v14, %v2219_v57 }
 0x20f   : > { %2273 = vst [vmem:[%s4047_s5 + $0x48] sm:$0xff] %v2257_v1 }
 0x210   : > { %v2225_v44 = vpop.permute.xlu0 %2224 }
 0x211   : > { %v2260_v58 = vsel %vm707_vm10, %v2160_v25, %v2225_v44 }
 0x212   : > { %2276 = vst [vmem:[%s4047_s5 + $0x60] sm:$0xff] %v2260_v58  ;;  %v2227_v48 = vpop.permute.xlu1 %2226 }
 0x213   : > { %v2261_v5 = vsel %vm707_vm10, %v2162_v20, %v2227_v48 }
 0x214   : > { %2277 = vst [vmem:[%s4047_s5 + $0x68] sm:$0xff] %v2261_v5  ;;  %v2229_v22 = vpop.permute.xlu0 %2228 }
 0x215   : > { %v2262_v52 = vsel %vm707_vm10, %v2165_v50, %v2229_v22 }
 0x216   : > { %2278 = vst [vmem:[%s4047_s5 + $0x70] sm:$0xff] %v2262_v52  ;;  %v2231_v30 = vpop.permute.xlu1 %2230 }
 0x217   : > { %v2263_v16 = vsel %vm707_vm10, %v2167_v15, %v2231_v30 }
 0x218   : > { %2279 = vst [vmem:[%s4047_s5 + $0x78] sm:$0xff] %v2263_v16 }
 0x219   : > { %3168 = shalt.err (!%p3165_p6)
}
 0x21a   : > { %s3169_s27 = scalar_lea.hbm %s4115_s10, 2048  ;;  %s3173_s12 = scalar_lea.hbm %s4180_s4, 8192 }
 0x21b   : > { %p3170_p7 = scmp.ne.s32.totalorder %s4115_s10, %s3169_s27  ;;  %p3174_p11 = scmp.lt.u32.totalorder %s4115_s10, %s4180_s4 }
 0x21c   : > { %p3175_p12 = scmp.lt.u32.totalorder %s3173_s12, %s3169_s27  ;;  %p3177_p0 = scmp.lt.u32.totalorder %s3169_s27, %s4115_s10 }
 0x21d   : > { %p3171_p9 = pnand %p3170_p7, %p3331_p3 }
 0x21e   : > { %p3176_p13 = por %p3175_p12, %p3174_p11 }
 0x21f   : > { %p3172_p10 = pneg %p3171_p9 }
 0x220   : > { %p3178_p1 = por %p3177_p0, %p3176_p13 }
 0x222   : > { %p3179_p2 = pnand %p3178_p1, %p3172_p10 }
 0x224   : > { %3182 = shalt.err (!%p3179_p2)
}
 0x225   : > { %s3253_s8 = smov 128   ;;  %s3254_s9 = smov 8  }
 0x226   : > { %3027 = dma.vmem_to_hbm [thread:$0]  (%p3331_p3), %s4117_s19, 2048, %s4115_s10, %s4124_s11, %s3253_s8, %s3253_s8, %s3254_s9  }
 0x227 PF: > { %p3033_p4 = scmp.ge.s32.totalorder %s3249_s22, 2  ;;  %s2312_s13 = sand.u32 1, %s3221_s15  }
 0x228   : > { %s2313_s14 = scalar_lea.sflag [#allocation3], %s2312_s13 }
 0x229   : > { %p3030_p5 = pnand %p3033_p4, %p3340_p8 }
 0x22b   : > { %3216 = dma.done.wait (!%p3030_p5), %s2313_s14, 2048  }
 0x22c   : > { %3218 = vsyncadd (!%p3030_p5), %s2313_s14, 4294965248  ;;  %s17_s22 = sadd.s32 1, %s3249_s22   ;;  %s4193_s15 = smov %s3225_s16 }
 0x22d   : > { %p14_p6 = scmp.ge.s32.totalorder %s17_s22, 6   ;;  %s4194_s16 = smov %s3229_s17 }
 0x22e   : > { %s4195_s17 = smov %s3349_s7  ;;  %s4196_s18 = smov %s3241_s20 }
 0x22f   : > { %s4197_s19 = smov %s3245_s21  ;;  %s4198_s20 = smov %s4201_s25 }
 0x230   : > { %s4199_s21 = smov %s4205_s26  ;;  %16 = sbr.rel (!%p14_p6) target bundleno = 5 (0x5), region = 80 }
 0x237   :  { %2318 = vsyncpa [#allocation3], 1 }
 0x238   :  { %2320 = vsyncpa [#allocation3 + $0x1], 1 }

</bundles_post_ra>
